<compile_context>
chip_gen: v7x
topology: tpu7x:2x2x1
jax: 0.10.0
libtpu: 0.0.40
codegen_flags: <defaults>
</compile_context>

<pallas_src>
import math

import jax
import jax.numpy as jnp
from jax.experimental import pallas as pl
from jax.experimental.pallas import tpu as pltpu

_OUT_PAD = 128      # 10 classes padded to one full lane tile (lane-dense store)
_NEG_INF = -1e9     # f32 bias on padded logit columns -> exp() underflows to 0


def _round_up(x, m):
    return ((x + m - 1) // m) * m


def _sigmoid_tanh(z):
    # sigmoid(z) == 0.5 * tanh(z/2) + 0.5 ; one EUP op, rest on the VALU.
    return 0.5 * jnp.tanh(0.5 * z) + 0.5


def _mlp_kernel(x_ref,
                w1_ref, b1_ref,
                w2_ref, b2_ref,
                w3_ref, b3_ref,
                w4_ref, b4_ref,
                o_ref):
    """Fused 4-layer MLP forward for one batch tile.

    x_ref:  (TB, 784) f32   (cast to bf16 in-kernel right before the MXU)
    wN_ref: (in_N, out_N) bf16 ; bN_ref: (1, out_N) f32
    o_ref:  (TB, 128) f32 -- log_softmax over 128 padded classes
            (columns 10..127 carry a -1e9 bias and are sliced off in wrapper)
    """
    bf16 = jnp.bfloat16

    # Layer 1: 784 -> 512, sigmoid. bf16 MXU feed, f32 accumulate / epilogue.
    x = x_ref[...].astype(bf16)
    h = jnp.dot(x, w1_ref[...], preferred_element_type=jnp.float32)
    h = _sigmoid_tanh(h + b1_ref[...]).astype(bf16)

    # Layer 2: 512 -> 256, sigmoid
    h = jnp.dot(h, w2_ref[...], preferred_element_type=jnp.float32)
    h = _sigmoid_tanh(h + b2_ref[...]).astype(bf16)

    # Layer 3: 256 -> 128, sigmoid
    h = jnp.dot(h, w3_ref[...], preferred_element_type=jnp.float32)
    h = _sigmoid_tanh(h + b3_ref[...]).astype(bf16)

    # Output layer: 128 -> 128 (10 real classes + 118 masked), log_softmax.
    z = jnp.dot(h, w4_ref[...], preferred_element_type=jnp.float32) + b4_ref[...]
    m = jnp.max(z, axis=-1, keepdims=True)            # max is from a real class
    shifted = z - m
    lse = jnp.log(jnp.sum(jnp.exp(shifted), axis=-1, keepdims=True))
    o_ref[...] = shifted - lse


def prepare_kernel_params(params):
    """Pad / cast the raw (in, out) f32 params into the kernel layout (done once)."""
    bf16 = jnp.bfloat16
    w4 = jnp.zeros((128, _OUT_PAD), jnp.float32).at[:, :10].set(params["w4"])
    b4 = jnp.full((1, _OUT_PAD), _NEG_INF, jnp.float32).at[:, :10].set(params["b4"])
    return {
        "w1": params["w1"].astype(bf16), "b1": params["b1"],
        "w2": params["w2"].astype(bf16), "b2": params["b2"],
        "w3": params["w3"].astype(bf16), "b3": params["b3"],
        "w4": w4.astype(bf16), "b4": b4,
    }


def _choose_tiling(B, batch_tile):
    """Pick (batch tile bt, padded batch Bp)."""
    if B >= 512:
        # 256-multiple tiles fill the MXU M dim on v6e/v7x and amortize the
        # ~0.35us per-grid-step overhead; keep >= 2 grid steps so the
        # ("parallel",) batch axis shards across both v7x TensorCores.
        bt = max(256, (min(batch_tile, B) // 256) * 256)
        Bp = _round_up(B, bt)
        while Bp // bt < 2 and bt > 256:
            bt -= 256
            Bp = _round_up(B, bt)
        return bt, Bp
    # Small batches (or caller-forced small tiles): 8-row sublane alignment.
    bt = _round_up(min(batch_tile, B), 8)
    return bt, _round_up(B, bt)


def mnist_model_forward(x, kparams, *, batch_tile=512):
    """Fused MLP forward. x: (B, 784) f32; kparams from prepare_kernel_params.

    Returns (B, 10) f32 log-probabilities (matches PyTorch forward).
    """
    B, F = x.shape
    assert F == 784, "expected flattened 28x28 MNIST rows"

    bt, Bp = _choose_tiling(B, batch_tile)
    xp = x if Bp == B else jnp.pad(x, ((0, Bp - B), (0, 0)))

    w1, b1 = kparams["w1"], kparams["b1"]
    w2, b2 = kparams["w2"], kparams["b2"]
    w3, b3 = kparams["w3"], kparams["b3"]
    w4, b4 = kparams["w4"], kparams["b4"]

    def full_spec(arr):
        # Weights / biases (~1.3 MB total in bf16) stay fully VMEM-resident;
        # their constant index_map means they are fetched once.
        shape = arr.shape
        return pl.BlockSpec(shape, lambda i: (0,) * len(shape))

    grid = (Bp // bt,)

    out = pl.pallas_call(
        _mlp_kernel,
        out_shape=jax.ShapeDtypeStruct((Bp, _OUT_PAD), jnp.float32),
        grid_spec=pltpu.PrefetchScalarGridSpec(
            num_scalar_prefetch=0,
            grid=grid,
            in_specs=[
                # Last dim 784 equals the full array dim -> legal block shape.
                pl.BlockSpec((bt, F), lambda i: (i, 0)),
                full_spec(w1), full_spec(b1),
                full_spec(w2), full_spec(b2),
                full_spec(w3), full_spec(b3),
                full_spec(w4), full_spec(b4),
            ],
            out_specs=pl.BlockSpec((bt, _OUT_PAD), lambda i: (i, 0)),
        ),
        compiler_params=pltpu.CompilerParams(
            dimension_semantics=("parallel",),       # batch axis shards across TCs
            vmem_limit_bytes=32 * 1024 * 1024,       # ~10 MiB used at bt=512
        ),
    )(xp, w1, b1, w2, b2, w3, b3, w4, b4)

    # Downstream consumers that can take the padded (Bp, 128) slab should use
    # `out` directly; the slice below matches the PyTorch (B, 10) contract.
    return out[:B, :10]


def _xavier_uniform(key, fan_in, fan_out, dtype=jnp.float32):
    """Matches torch.nn.init.xavier_uniform_ (gain=1); stored (in, out)."""
    limit = math.sqrt(6.0 / (fan_in + fan_out))
    return jax.random.uniform(key, (fan_in, fan_out), dtype=dtype,
                              minval=-limit, maxval=limit)


def init_params(key):
    dims = [(784, 512), (512, 256), (256, 128), (128, 10)]
    keys = jax.random.split(key, len(dims))
    params = {}
    for idx, ((fi, fo), k) in enumerate(zip(dims, keys), start=1):
        params[f"w{idx}"] = _xavier_uniform(k, fi, fo)
        params[f"b{idx}"] = jnp.full((1, fo), 0.01, dtype=jnp.float32)  # bias.fill_(0.01)
    return params


def _reference_forward_f32(x, params):
    h = jax.nn.sigmoid(x @ params["w1"] + params["b1"])
    h = jax.nn.sigmoid(h @ params["w2"] + params["b2"])
    h = jax.nn.sigmoid(h @ params["w3"] + params["b3"])
    z = h @ params["w4"] + params["b4"]
    return jax.nn.log_softmax(z, axis=1)


def _reference_forward_bf16(x, params):
    """Pure-JAX reference mirroring the kernel's bf16-in / f32-acc matmuls."""
    bf16 = jnp.bfloat16

    def dot(a, w):
        return jnp.dot(a.astype(bf16), w.astype(bf16),
                       preferred_element_type=jnp.float32)

    h = _sigmoid_tanh(dot(x, params["w1"]) + params["b1"])
    h = _sigmoid_tanh(dot(h, params["w2"]) + params["b2"])
    h = _sigmoid_tanh(dot(h, params["w3"]) + params["b3"])
    z = dot(h, params["w4"]) + params["b4"]
    return jax.nn.log_softmax(z, axis=1)


# TODO(synk): training utilities (fit/validate/optimizer/data loaders) are host-side
# PyTorch plumbing, not part of the forward pass, and are not translated.

if __name__ == "__main__":
    key = jax.random.PRNGKey(0)
    k_params, k_x1, k_x2, k_x3 = jax.random.split(key, 4)

    raw_params = init_params(k_params)
    kparams = prepare_kernel_params(raw_params)

    # Case 1: small demo batch of flattened 28x28 images (single-tile grid).
    B1 = 8
    x1 = jax.random.normal(k_x1, (B1, 784), dtype=jnp.float32)
    out1 = jax.block_until_ready(mnist_model_forward(x1, kparams))
    assert out1.shape == (B1, 10)
    # rows are valid log-probabilities
    assert jnp.allclose(jnp.sum(jnp.exp(out1), axis=1), 1.0, atol=1e-3)
    ref1 = jax.block_until_ready(_reference_forward_bf16(x1, raw_params))
    assert jnp.allclose(out1, ref1, atol=1e-2, rtol=1e-2), "mismatch vs bf16 reference"
    ref1_f32 = _reference_forward_f32(x1, raw_params)
    assert float(jnp.max(jnp.abs(out1 - ref1_f32))) < 0.15, "too far from f32 reference"

    # Case 2: ragged batch with a real multi-step grid (40 rows, 16-row tiles
    # -> 3 steps; batch padded to 48 inside the wrapper and sliced back).
    B2 = 40
    x2 = jax.random.normal(k_x2, (B2, 784), dtype=jnp.float32)
    out2 = jax.block_until_ready(mnist_model_forward(x2, kparams, batch_tile=16))
    assert out2.shape == (B2, 10)
    ref2 = _reference_forward_bf16(x2, raw_params)
    assert jnp.allclose(out2, ref2, atol=1e-2, rtol=1e-2), "ragged-batch mismatch"

    # Case 3: large-batch path (B >= 512): 256-multiple tiles, >= 2 grid steps.
    B3 = 520
    x3 = jax.random.normal(k_x3, (B3, 784), dtype=jnp.float32)
    out3 = jax.block_until_ready(mnist_model_forward(x3, kparams))
    assert out3.shape == (B3, 10)
    assert jnp.allclose(jnp.sum(jnp.exp(out3), axis=1), 1.0, atol=1e-3)
    ref3 = _reference_forward_bf16(x3, raw_params)
    assert jnp.allclose(out3, ref3, atol=1e-2, rtol=1e-2), "large-batch mismatch"

    print("KERNEL_OK")
</pallas_src>

<mosaic_0001>
module attributes {stable_mosaic.version = 11 : i64} {
  func.func @_mlp_kernel(%arg0: i32, %arg1: memref<8x784xf32, #tpu.memory_space<vmem>>, %arg2: memref<784x512xbf16, #tpu.memory_space<vmem>>, %arg3: memref<1x512xf32, #tpu.memory_space<vmem>>, %arg4: memref<512x256xbf16, #tpu.memory_space<vmem>>, %arg5: memref<1x256xf32, #tpu.memory_space<vmem>>, %arg6: memref<256x128xbf16, #tpu.memory_space<vmem>>, %arg7: memref<1x128xf32, #tpu.memory_space<vmem>>, %arg8: memref<128x128xbf16, #tpu.memory_space<vmem>>, %arg9: memref<1x128xf32, #tpu.memory_space<vmem>>, %arg10: memref<8x128xf32, #tpu.memory_space<vmem>>) attributes {dimension_semantics = [#tpu.dimension_semantics<parallel>], iteration_bounds = array<i64: 1>, scalar_prefetch = 0 : i64, scratch_operands = 0 : i64, tpu.core_type = #tpu.core_type<tc>, window_params = [{transform_indices = @transform_0, window_bounds = array<i64: 8, 784>}, {pipeline_mode = #tpu.pipeline_mode<synchronous>, transform_indices = @transform_1, window_bounds = array<i64: 784, 512>}, {pipeline_mode = #tpu.pipeline_mode<synchronous>, transform_indices = @transform_2, window_bounds = array<i64: 1, 512>}, {pipeline_mode = #tpu.pipeline_mode<synchronous>, transform_indices = @transform_3, window_bounds = array<i64: 512, 256>}, {pipeline_mode = #tpu.pipeline_mode<synchronous>, transform_indices = @transform_4, window_bounds = array<i64: 1, 256>}, {pipeline_mode = #tpu.pipeline_mode<synchronous>, transform_indices = @transform_5, window_bounds = array<i64: 256, 128>}, {pipeline_mode = #tpu.pipeline_mode<synchronous>, transform_indices = @transform_6, window_bounds = array<i64: 1, 128>}, {pipeline_mode = #tpu.pipeline_mode<synchronous>, transform_indices = @transform_7, window_bounds = array<i64: 128, 128>}, {pipeline_mode = #tpu.pipeline_mode<synchronous>, transform_indices = @transform_8, window_bounds = array<i64: 1, 128>}, {transform_indices = @transform_9, window_bounds = array<i64: 8, 128>}]} {
    %c0 = arith.constant 0 : index
    %c0_0 = arith.constant 0 : index
    %0 = vector.load %arg1[%c0, %c0_0] : memref<8x784xf32, #tpu.memory_space<vmem>>, vector<8x784xf32>
    %1 = arith.truncf %0 : vector<8x784xf32> to vector<8x784xbf16>
    %c0_1 = arith.constant 0 : index
    %c0_2 = arith.constant 0 : index
    %2 = vector.load %arg2[%c0_1, %c0_2] : memref<784x512xbf16, #tpu.memory_space<vmem>>, vector<784x512xbf16>
    %cst = arith.constant dense<0.000000e+00> : vector<8x512xf32>
    %3 = tpu.matmul %1, %2, %cst {dimension_numbers = #tpu.dot_dimension_numbers<[1], [0], [0], [1], [0, 0, 1, 1], [], []>} : vector<8x784xbf16>, vector<784x512xbf16>, vector<8x512xf32> -> vector<8x512xf32>
    %c0_3 = arith.constant 0 : index
    %c0_4 = arith.constant 0 : index
    %4 = vector.load %arg3[%c0_3, %c0_4] : memref<1x512xf32, #tpu.memory_space<vmem>>, vector<1x512xf32>
    %5 = vector.broadcast %4 : vector<1x512xf32> to vector<8x512xf32>
    %6 = arith.addf %3, %5 : vector<8x512xf32>
    %cst_5 = arith.constant 5.000000e-01 : f32
    %7 = vector.broadcast %cst_5 : f32 to vector<8x512xf32>
    %8 = arith.mulf %7, %6 : vector<8x512xf32>
    %9 = math.tanh %8 : vector<8x512xf32>
    %cst_6 = arith.constant 5.000000e-01 : f32
    %10 = vector.broadcast %cst_6 : f32 to vector<8x512xf32>
    %11 = arith.mulf %10, %9 : vector<8x512xf32>
    %cst_7 = arith.constant 5.000000e-01 : f32
    %12 = vector.broadcast %cst_7 : f32 to vector<8x512xf32>
    %13 = arith.addf %11, %12 : vector<8x512xf32>
    %14 = arith.truncf %13 : vector<8x512xf32> to vector<8x512xbf16>
    %c0_8 = arith.constant 0 : index
    %c0_9 = arith.constant 0 : index
    %15 = vector.load %arg4[%c0_8, %c0_9] : memref<512x256xbf16, #tpu.memory_space<vmem>>, vector<512x256xbf16>
    %cst_10 = arith.constant dense<0.000000e+00> : vector<8x256xf32>
    %16 = tpu.matmul %14, %15, %cst_10 {dimension_numbers = #tpu.dot_dimension_numbers<[1], [0], [0], [1], [0, 0, 1, 1], [], []>} : vector<8x512xbf16>, vector<512x256xbf16>, vector<8x256xf32> -> vector<8x256xf32>
    %c0_11 = arith.constant 0 : index
    %c0_12 = arith.constant 0 : index
    %17 = vector.load %arg5[%c0_11, %c0_12] : memref<1x256xf32, #tpu.memory_space<vmem>>, vector<1x256xf32>
    %18 = vector.broadcast %17 : vector<1x256xf32> to vector<8x256xf32>
    %19 = arith.addf %16, %18 : vector<8x256xf32>
    %cst_13 = arith.constant 5.000000e-01 : f32
    %20 = vector.broadcast %cst_13 : f32 to vector<8x256xf32>
    %21 = arith.mulf %20, %19 : vector<8x256xf32>
    %22 = math.tanh %21 : vector<8x256xf32>
    %cst_14 = arith.constant 5.000000e-01 : f32
    %23 = vector.broadcast %cst_14 : f32 to vector<8x256xf32>
    %24 = arith.mulf %23, %22 : vector<8x256xf32>
    %cst_15 = arith.constant 5.000000e-01 : f32
    %25 = vector.broadcast %cst_15 : f32 to vector<8x256xf32>
    %26 = arith.addf %24, %25 : vector<8x256xf32>
    %27 = arith.truncf %26 : vector<8x256xf32> to vector<8x256xbf16>
    %c0_16 = arith.constant 0 : index
    %c0_17 = arith.constant 0 : index
    %28 = vector.load %arg6[%c0_16, %c0_17] : memref<256x128xbf16, #tpu.memory_space<vmem>>, vector<256x128xbf16>
    %cst_18 = arith.constant dense<0.000000e+00> : vector<8x128xf32>
    %29 = tpu.matmul %27, %28, %cst_18 {dimension_numbers = #tpu.dot_dimension_numbers<[1], [0], [0], [1], [0, 0, 1, 1], [], []>} : vector<8x256xbf16>, vector<256x128xbf16>, vector<8x128xf32> -> vector<8x128xf32>
    %c0_19 = arith.constant 0 : index
    %c0_20 = arith.constant 0 : index
    %30 = vector.load %arg7[%c0_19, %c0_20] : memref<1x128xf32, #tpu.memory_space<vmem>>, vector<1x128xf32>
    %31 = vector.broadcast %30 : vector<1x128xf32> to vector<8x128xf32>
    %32 = arith.addf %29, %31 : vector<8x128xf32>
    %cst_21 = arith.constant 5.000000e-01 : f32
    %33 = vector.broadcast %cst_21 : f32 to vector<8x128xf32>
    %34 = arith.mulf %33, %32 : vector<8x128xf32>
    %35 = math.tanh %34 : vector<8x128xf32>
    %cst_22 = arith.constant 5.000000e-01 : f32
    %36 = vector.broadcast %cst_22 : f32 to vector<8x128xf32>
    %37 = arith.mulf %36, %35 : vector<8x128xf32>
    %cst_23 = arith.constant 5.000000e-01 : f32
    %38 = vector.broadcast %cst_23 : f32 to vector<8x128xf32>
    %39 = arith.addf %37, %38 : vector<8x128xf32>
    %40 = arith.truncf %39 : vector<8x128xf32> to vector<8x128xbf16>
    %c0_24 = arith.constant 0 : index
    %c0_25 = arith.constant 0 : index
    %41 = vector.load %arg8[%c0_24, %c0_25] : memref<128x128xbf16, #tpu.memory_space<vmem>>, vector<128x128xbf16>
    %cst_26 = arith.constant dense<0.000000e+00> : vector<8x128xf32>
    %42 = tpu.matmul %40, %41, %cst_26 {dimension_numbers = #tpu.dot_dimension_numbers<[1], [0], [0], [1], [0, 0, 1, 1], [], []>} : vector<8x128xbf16>, vector<128x128xbf16>, vector<8x128xf32> -> vector<8x128xf32>
    %c0_27 = arith.constant 0 : index
    %c0_28 = arith.constant 0 : index
    %43 = vector.load %arg9[%c0_27, %c0_28] : memref<1x128xf32, #tpu.memory_space<vmem>>, vector<1x128xf32>
    %44 = vector.broadcast %43 : vector<1x128xf32> to vector<8x128xf32>
    %45 = arith.addf %42, %44 : vector<8x128xf32>
    %cst_29 = arith.constant dense<0xFF800000> : vector<8xf32>
    %46 = vector.multi_reduction <maximumf>, %45, %cst_29 [1] : vector<8x128xf32> to vector<8xf32>
    %47 = vector.shape_cast %46 : vector<8xf32> to vector<8x1xf32>
    %48 = vector.broadcast %47 : vector<8x1xf32> to vector<8x128xf32>
    %49 = arith.subf %45, %48 : vector<8x128xf32>
    %50 = math.exp %49 : vector<8x128xf32>
    %cst_30 = arith.constant dense<0.000000e+00> : vector<8xf32>
    %51 = vector.multi_reduction <add>, %50, %cst_30 [1] : vector<8x128xf32> to vector<8xf32>
    %52 = vector.shape_cast %51 : vector<8xf32> to vector<8x1xf32>
    %53 = math.log %52 : vector<8x1xf32>
    %54 = vector.broadcast %53 : vector<8x1xf32> to vector<8x128xf32>
    %55 = arith.subf %49, %54 : vector<8x128xf32>
    %c0_31 = arith.constant 0 : index
    %c0_32 = arith.constant 0 : index
    %56 = vector.load %arg10[%c0_31, %c0_32] : memref<8x128xf32, #tpu.memory_space<vmem>>, vector<8x128xf32>
    tpu.vector_store %arg10[%c0_31, %c0_32], %55 {strides = array<i32>} : memref<8x128xf32, #tpu.memory_space<vmem>>, vector<8x128xf32>,
    return
  }
  func.func @transform_0(%arg0: i32) -> (i32, i32) {
    %c0_i32 = arith.constant 0 : i32
    %c0_i32_0 = arith.constant 0 : i32
    return %arg0, %c0_i32 : i32, i32
  }
  func.func @transform_1(%arg0: i32) -> (i32, i32) {
    %c0_i32 = arith.constant 0 : i32
    %c0_i32_0 = arith.constant 0 : i32
    %c0_i32_1 = arith.constant 0 : i32
    return %c0_i32, %c0_i32_0 : i32, i32
  }
  func.func @transform_2(%arg0: i32) -> (i32, i32) {
    %c0_i32 = arith.constant 0 : i32
    %c0_i32_0 = arith.constant 0 : i32
    %c0_i32_1 = arith.constant 0 : i32
    return %c0_i32, %c0_i32_0 : i32, i32
  }
  func.func @transform_3(%arg0: i32) -> (i32, i32) {
    %c0_i32 = arith.constant 0 : i32
    %c0_i32_0 = arith.constant 0 : i32
    %c0_i32_1 = arith.constant 0 : i32
    return %c0_i32, %c0_i32_0 : i32, i32
  }
  func.func @transform_4(%arg0: i32) -> (i32, i32) {
    %c0_i32 = arith.constant 0 : i32
    %c0_i32_0 = arith.constant 0 : i32
    %c0_i32_1 = arith.constant 0 : i32
    return %c0_i32, %c0_i32_0 : i32, i32
  }
  func.func @transform_5(%arg0: i32) -> (i32, i32) {
    %c0_i32 = arith.constant 0 : i32
    %c0_i32_0 = arith.constant 0 : i32
    %c0_i32_1 = arith.constant 0 : i32
    return %c0_i32, %c0_i32_0 : i32, i32
  }
  func.func @transform_6(%arg0: i32) -> (i32, i32) {
    %c0_i32 = arith.constant 0 : i32
    %c0_i32_0 = arith.constant 0 : i32
    %c0_i32_1 = arith.constant 0 : i32
    return %c0_i32, %c0_i32_0 : i32, i32
  }
  func.func @transform_7(%arg0: i32) -> (i32, i32) {
    %c0_i32 = arith.constant 0 : i32
    %c0_i32_0 = arith.constant 0 : i32
    %c0_i32_1 = arith.constant 0 : i32
    return %c0_i32, %c0_i32_0 : i32, i32
  }
  func.func @transform_8(%arg0: i32) -> (i32, i32) {
    %c0_i32 = arith.constant 0 : i32
    %c0_i32_0 = arith.constant 0 : i32
    %c0_i32_1 = arith.constant 0 : i32
    return %c0_i32, %c0_i32_0 : i32, i32
  }
  func.func @transform_9(%arg0: i32) -> (i32, i32) {
    %c0_i32 = arith.constant 0 : i32
    %c0_i32_0 = arith.constant 0 : i32
    return %arg0, %c0_i32 : i32, i32
  }
}

</mosaic_0001>

<bundles_post_ra>
// kernel: tpu_custom_call.1
= control target key start
LH: loop header
LB: loop body
LE: loop exit
PB: predicated region body
PF: predicated region fallthrough
CT: control target
= control target key end

     0   :  { %14 = vsyncpa [#allocation3], 0  ;;  %s3622_s0 = inlined_call_operand.hbm [shape: f32[8,784], index: 0, kind: input, shape index: {}]   ;;  %s3623_s1 = inlined_call_operand.hbm [shape: bf16[784,512], index: 1, kind: input, shape index: {}]   ;;  %s3624_s2 = inlined_call_operand.vmem [shape: f32[1,512], index: 2, kind: input, shape index: {}]   ;;  %s3625_s3 = inlined_call_operand.hbm [shape: bf16[512,256], index: 3, kind: input, shape index: {}]   ;;  %s3626_s4 = inlined_call_operand.vmem [shape: f32[1,256], index: 4, kind: input, shape index: {}]   ;;  %s3627_s5 = inlined_call_operand.hbm [shape: bf16[256,128], index: 5, kind: input, shape index: {}]   ;;  %s3628_s6 = inlined_call_operand.vmem [shape: f32[1,128], index: 6, kind: input, shape index: {}]   ;;  %s3629_s7 = inlined_call_operand.hbm [shape: bf16[128,128], index: 7, kind: input, shape index: {}]   ;;  %s3630_s8 = inlined_call_operand.vmem [shape: f32[1,128], index: 8, kind: input, shape index: {}]   ;;  %s3631_s9 = inlined_call_operand.hbm [shape: f32[8,128], index: 9, kind: output, shape index: {}]  }
   0x1   :  { %15 = vsyncpa [#allocation6], 0 }
   0x2   :  { %16 = vsyncpa [#allocation9], 0 }
   0x3   :  { %17 = vsyncpa [#allocation4], 0  ;;  %s3429_s30 = smov [#allocation5]   ;;  %s3289_s13 = scalar_lea.hbm %s3623_s1, 25088 }
   0x4   :  { %s33_s10 = sshll.u32 %s3429_s30, 4  ;;  %p3290_p0 = scmp.ne.s32.totalorder %s3623_s1, %s3289_s13  ;;  %s34_s10 = int_to_ptr.vmem [resolvable:$true] %s33_s10 }
   0x5   :  { %p3293_p1 = scmp.lt.u32.totalorder %s3289_s13, %s3623_s1 }
   0x7   :  { %p3295_p2 = pnand %p3293_p1, %p3290_p0 }
   0x9   :  { %3298 = shalt.err (!%p3295_p2)
}
   0xa   :  { %s3299_s18 = scalar_lea.vmem %s34_s10, 25088  ;;  %p3304_p4 = scmp.lt.s32.totalorder %s34_s10, %s34_s10 }
   0xb   :  { %p3300_p3 = scmp.ne.s32.totalorder %s34_s10, %s3299_s18  ;;  %p3305_p5 = scmp.lt.s32.totalorder %s3299_s18, %s3299_s18 }
   0xd   :  { %p3306_p6 = por %p3305_p5, %p3304_p4 }
   0xf   :  { %p3307_p7 = pnand %p3306_p6, %p3300_p3 }
  0x11   :  { %3310 = shalt.err (!%p3307_p7)
}
  0x12   :  { %s3430_s19 = smov 256   ;;  %s3431_s20 = smov 16  }
  0x13   :  { %39 = dma.hbm_to_vmem [thread:$0]  %s3623_s1, 25088, %s34_s10, [#allocation6], %s3430_s19, %s3430_s19, %s3431_s20  }
  0x14   :  { %s3432_s23 = smov [#allocation8]   ;;  %s3311_s27 = scalar_lea.hbm %s3627_s5, 2048 }
  0x15   :  { %s61_s24 = sshll.u32 %s3432_s23, 4  ;;  %p3312_p8 = scmp.ne.s32.totalorder %s3627_s5, %s3311_s27  ;;  %s62_s24 = int_to_ptr.vmem [resolvable:$true] %s61_s24 }
  0x16   :  { %p3315_p9 = scmp.lt.u32.totalorder %s3311_s27, %s3627_s5 }
  0x18   :  { %p3317_p10 = pnand %p3315_p9, %p3312_p8 }
  0x1a   :  { %3320 = shalt.err (!%p3317_p10)
}
  0x1b   :  { %s3321_s12 = scalar_lea.vmem %s62_s24, 2048  ;;  %p3326_p12 = scmp.lt.s32.totalorder %s62_s24, %s62_s24 }
  0x1c   :  { %p3322_p11 = scmp.ne.s32.totalorder %s62_s24, %s3321_s12  ;;  %p3327_p13 = scmp.lt.s32.totalorder %s3321_s12, %s3321_s12 }
  0x1e   :  { %p3328_p0 = por %p3327_p13, %p3326_p12 }
  0x20   :  { %p3329_p1 = pnand %p3328_p0, %p3322_p11 }
  0x22   :  { %3332 = shalt.err (!%p3329_p1)
}
  0x23   :  { %s3433_s1 = smov 64   ;;  %s3434_s10 = smov 4  }
  0x24   :  { %67 = dma.hbm_to_vmem [thread:$0]  %s3627_s5, 2048, %s62_s24, [#allocation9], %s3433_s1, %s3433_s1, %s3434_s10  }
  0x25   :  { %s3435_s15 = smov [#allocation2]   ;;  %s3436_s17 = smov [#allocation7]  }
  0x26   :  { %s24_s16 = sshll.u32 %s3435_s15, 4  ;;  %s47_s18 = sshll.u32 %s3436_s17, 4  ;;  %s25_s16 = int_to_ptr.vmem [resolvable:$true] %s24_s16  ;;  %s3521_s18 = int_to_ptr.vmem [resolvable:$true] %s47_s18 }
  0x27   :  { %s3333_s21 = scalar_lea.hbm %s3622_s0, 896 }
  0x28   :  { %p3334_p2 = scmp.ne.s32.totalorder %s3622_s0, %s3333_s21  ;;  %p3337_p3 = scmp.lt.u32.totalorder %s3333_s21, %s3622_s0 }
  0x2a   :  { %p3339_p4 = pnand %p3337_p3, %p3334_p2 }
  0x2c   :  { %3342 = shalt.err (!%p3339_p4)
}
  0x2d   :  { %s3343_s5 = scalar_lea.vmem %s25_s16, 896  ;;  %p3348_p6 = scmp.lt.s32.totalorder %s25_s16, %s25_s16 }
  0x2e   :  { %p3344_p5 = scmp.ne.s32.totalorder %s25_s16, %s3343_s5  ;;  %p3349_p7 = scmp.lt.s32.totalorder %s3343_s5, %s3343_s5 }
  0x30   :  { %p3350_p8 = por %p3349_p7, %p3348_p6 }
  0x32   :  { %p3351_p9 = pnand %p3350_p8, %p3344_p5 }
  0x34   :  { %3354 = shalt.err (!%p3351_p9)
}
  0x35   :  { %27 = dma.hbm_to_vmem [thread:$0]  %s3622_s0, 896, %s25_s16, [#allocation3]  }
  0x36   :  { %s3355_s30 = scalar_lea.hbm %s3625_s3, 8192 }
  0x37   :  { %p3356_p10 = scmp.ne.s32.totalorder %s3625_s3, %s3355_s30  ;;  %p3359_p11 = scmp.lt.u32.totalorder %s3355_s30, %s3625_s3 }
  0x39   :  { %p3361_p12 = pnand %p3359_p11, %p3356_p10 }
  0x3b   :  { %3364 = shalt.err (!%p3361_p12)
}
  0x3c   :  { %s3365_s15 = scalar_lea.vmem %s3521_s18, 8192  ;;  %p3370_p0 = scmp.lt.s32.totalorder %s3521_s18, %s3521_s18 }
  0x3d   :  { %p3366_p13 = scmp.ne.s32.totalorder %s3521_s18, %s3365_s15  ;;  %p3371_p1 = scmp.lt.s32.totalorder %s3365_s15, %s3365_s15 }
  0x3f   :  { %p3372_p2 = por %p3371_p1, %p3370_p0 }
  0x41   :  { %p3373_p3 = pnand %p3372_p2, %p3366_p13 }
  0x43   :  { %3376 = shalt.err (!%p3373_p3)
}
  0x44   :  { %s3437_s0 = smov 128   ;;  %s3438_s16 = smov 8  }
  0x45   :  { %53 = dma.hbm_to_vmem [thread:$0]  %s3625_s3, 8192, %s3521_s18, [#allocation6], %s3437_s0, %s3437_s0, %s3438_s16  }
  0x46   :  { %s3439_s20 = smov [#allocation10]   ;;  %s3377_s25 = scalar_lea.hbm %s3629_s7, 1024 }
  0x47   :  { %s75_s21 = sshll.u32 %s3439_s20, 4  ;;  %p3378_p4 = scmp.ne.s32.totalorder %s3629_s7, %s3377_s25  ;;  %s76_s21 = int_to_ptr.vmem [resolvable:$true] %s75_s21 }
  0x48   :  { %p3381_p5 = scmp.lt.u32.totalorder %s3377_s25, %s3629_s7 }
  0x4a   :  { %p3383_p6 = pnand %p3381_p5, %p3378_p4 }
  0x4c   :  { %3386 = shalt.err (!%p3383_p6)
}
  0x4d   :  { %s3387_s28 = scalar_lea.vmem %s76_s21, 1024  ;;  %p3392_p8 = scmp.lt.s32.totalorder %s76_s21, %s76_s21 }
  0x4e   :  { %p3388_p7 = scmp.ne.s32.totalorder %s76_s21, %s3387_s28  ;;  %p3393_p9 = scmp.lt.s32.totalorder %s3387_s28, %s3387_s28 }
  0x50   :  { %p3394_p10 = por %p3393_p9, %p3392_p8 }
  0x52   :  { %p3395_p11 = pnand %p3394_p10, %p3388_p7 }
  0x54   :  { %3398 = shalt.err (!%p3395_p11)
}
  0x55   :  { %81 = dma.hbm_to_vmem [thread:$0]  %s3629_s7, 1024, %s76_s21, [#allocation9], %s3433_s1, %s3433_s1, %s3434_s10  }
  0x56   :  { %3421 = dma.done.wait [#allocation3], 896  }
  0x57   :  { %3422 = vsyncadd [#allocation3], 4294966400 }
  0x58   :  { %3423 = dma.done.wait [#allocation6], 33280  }
  0x59   :  { %3424 = vsyncadd [#allocation6], 4294934016 }
  0x5a   :  { %3425 = dma.done.wait [#allocation9], 3072  }
  0x5b   :  { %3426 = vsyncadd [#allocation9], 4294964224  ;;  %v3440_v0 = vmov 0   ;;  %v2857_v1 = vld [vmem:[#allocation5 + $0x4] ss:$16 sps:$4 sm:$0xff]   ;;  %v106_v9 = vld [vmem:[#allocation2 + $0x30] sm:$0xff] }
  0x5c   :  { %1471 = vmatprep.mubr.bf16.mxu1 %v3440_v0  ;;  %v2859_v2 = vld [vmem:[#allocation5 + $0x604] ss:$16 sps:$4 sm:$0xff]   ;;  %1316 = vmatprep.subr.bf16.mxu0 %v2857_v1  ;;  %v2861_v3 = vld [vmem:[#allocation5] ss:$16 sps:$4 sm:$0xff]   ;;  %v2865_v6 = vld [vmem:[#allocation5 + $0x8] ss:$16 sps:$4 sm:$0xff]   ;;  %v3568_v10 = vpack.c.bf16 %v106_v9, %v106_v9 }
  0x5d   :  { %v2862_v4 = vld [vmem:[#allocation5 + $0x600] ss:$16 sps:$4 sm:$0xff]   ;;  %1439 = vmatprep.subr.bf16.mxu1 %v2859_v2  ;;  %v2863_v5 = vld [vmem:[#allocation5 + $0x24] ss:$16 sps:$4 sm:$0xff]   ;;  %1317 = vmatpush1.bf16.msra.mxu0 %v2861_v3  ;;  %v2867_v7 = vld [vmem:[#allocation5 + $0xc] ss:$16 sps:$4 sm:$0xff]  }
  0x5e   :  { %1440 = vmatpush1.bf16.msra.mxu1 %v2862_v4  ;;  %1318 = vmatprep.subr.bf16.mxu0 %v2863_v5  ;;  %v2868_v8 = vld [vmem:[#allocation5 + $0x20] ss:$16 sps:$4 sm:$0xff]   ;;  %vm1312_vm0 = vcmask 130048   ;;  %v2869_v11 = vld [vmem:[#allocation5 + $0x44] ss:$16 sps:$4 sm:$0xff]   ;;  %vm3442_vm1 = vmmov 0  }
  0x5f   :  { %1480 = vmatprep.subr.bf16.mxu1 %v2867_v7  ;;  %v2871_v12 = vld [vmem:[#allocation5 + $0x28] ss:$16 sps:$4 sm:$0xff]   ;;  %v2873_v13 = vld [vmem:[#allocation5 + $0x2c] ss:$16 sps:$4 sm:$0xff]   ;;  %v2874_v14 = vld [vmem:[#allocation5 + $0x40] ss:$16 sps:$4 sm:$0xff]  }
  0x60   :  { %v2875_v15 = vld [vmem:[#allocation5 + $0x64] ss:$16 sps:$4 sm:$0xff]   ;;  %v2879_v16 = vld [vmem:[#allocation5 + $0x4c] ss:$16 sps:$4 sm:$0xff]   ;;  %v2880_v17 = vld [vmem:[#allocation5 + $0x60] ss:$16 sps:$4 sm:$0xff]  }
  0x61   :  { %1319 = vmatpush1.bf16.msra.mxu0 %v2868_v8  ;;  %2667 = vmatmul.mubr.msk.bf16.vlgmr.msra.gmra.mrb[0].mxu1 %vm1312_vm0, %v3568_v10  ;;  %v2877_v18 = vld [vmem:[#allocation5 + $0x48] ss:$16 sps:$4 sm:$0xff]   ;;  %v2881_v19 = vld [vmem:[#allocation5 + $0x84] ss:$16 sps:$4 sm:$0xff]   ;;  %v2885_v20 = vld [vmem:[#allocation5 + $0x6c] ss:$16 sps:$4 sm:$0xff]  }
  0x62   :  { %1481 = vmatpush1.bf16.msra.mxu1 %v2865_v6  ;;  %1320 = vmatprep.subr.bf16.mxu0 %v2869_v11  ;;  %v2883_v21 = vld [vmem:[#allocation5 + $0x68] ss:$16 sps:$4 sm:$0xff]   ;;  %v2886_v22 = vld [vmem:[#allocation5 + $0x80] ss:$16 sps:$4 sm:$0xff]   ;;  %v2887_v23 = vld [vmem:[#allocation5 + $0xa4] ss:$16 sps:$4 sm:$0xff]  }
  0x63   :  { %1482 = vmatprep.subr.bf16.mxu1 %v2873_v13  ;;  %v2891_v24 = vld [vmem:[#allocation5 + $0x8c] ss:$16 sps:$4 sm:$0xff]   ;;  %v2892_v25 = vld [vmem:[#allocation5 + $0xa0] ss:$16 sps:$4 sm:$0xff]   ;;  %v2889_v26 = vld [vmem:[#allocation5 + $0x88] ss:$16 sps:$4 sm:$0xff]  }
  0x64   :  { %v2893_v27 = vld [vmem:[#allocation5 + $0xc4] ss:$16 sps:$4 sm:$0xff]   ;;  %v2897_v28 = vld [vmem:[#allocation5 + $0xac] ss:$16 sps:$4 sm:$0xff]   ;;  %v2895_v29 = vld [vmem:[#allocation5 + $0xa8] ss:$16 sps:$4 sm:$0xff]  }
  0x65   :  { %1321 = vmatpush1.bf16.msra.mxu0 %v2874_v14  ;;  %v2898_v30 = vld [vmem:[#allocation5 + $0xc0] ss:$16 sps:$4 sm:$0xff]   ;;  %v2899_v31 = vld [vmem:[#allocation5 + $0xe4] ss:$16 sps:$4 sm:$0xff]   ;;  %v2903_v32 = vld [vmem:[#allocation5 + $0xcc] ss:$16 sps:$4 sm:$0xff]  }
  0x66   :  { %1483 = vmatpush1.bf16.msra.mxu1 %v2871_v12  ;;  %1322 = vmatprep.subr.bf16.mxu0 %v2875_v15  ;;  %v2904_v33 = vld [vmem:[#allocation5 + $0xe0] ss:$16 sps:$4 sm:$0xff]   ;;  %v2901_v34 = vld [vmem:[#allocation5 + $0xc8] ss:$16 sps:$4 sm:$0xff]   ;;  %v2905_v35 = vld [vmem:[#allocation5 + $0x104] ss:$16 sps:$4 sm:$0xff]  }
  0x67   :  { %1484 = vmatprep.subr.bf16.mxu1 %v2879_v16  ;;  %v2909_v36 = vld [vmem:[#allocation5 + $0xec] ss:$16 sps:$4 sm:$0xff]   ;;  %v2907_v37 = vld [vmem:[#allocation5 + $0xe8] ss:$16 sps:$4 sm:$0xff]   ;;  %v2910_v38 = vld [vmem:[#allocation5 + $0x100] ss:$16 sps:$4 sm:$0xff]  }
  0x68   :  { %v2911_v39 = vld [vmem:[#allocation5 + $0x124] ss:$16 sps:$4 sm:$0xff]   ;;  %v2915_v40 = vld [vmem:[#allocation5 + $0x10c] ss:$16 sps:$4 sm:$0xff]   ;;  %v2916_v41 = vld [vmem:[#allocation5 + $0x120] ss:$16 sps:$4 sm:$0xff]  }
  0x69   :  { %1323 = vmatpush1.bf16.msra.mxu0 %v2880_v17  ;;  %v2913_v42 = vld [vmem:[#allocation5 + $0x108] ss:$16 sps:$4 sm:$0xff]   ;;  %v2917_v43 = vld [vmem:[#allocation5 + $0x144] ss:$16 sps:$4 sm:$0xff]   ;;  %v2921_v44 = vld [vmem:[#allocation5 + $0x12c] ss:$16 sps:$4 sm:$0xff]  }
  0x6a   :  { %1485 = vmatpush1.bf16.msra.mxu1 %v2877_v18  ;;  %1324 = vmatprep.subr.bf16.mxu0 %v2881_v19  ;;  %v2919_v45 = vld [vmem:[#allocation5 + $0x128] ss:$16 sps:$4 sm:$0xff]   ;;  %v2922_v46 = vld [vmem:[#allocation5 + $0x140] ss:$16 sps:$4 sm:$0xff]   ;;  %v2923_v47 = vld [vmem:[#allocation5 + $0x164] ss:$16 sps:$4 sm:$0xff]  }
  0x6b   :  { %1486 = vmatprep.subr.bf16.mxu1 %v2885_v20  ;;  %v2927_v48 = vld [vmem:[#allocation5 + $0x14c] ss:$16 sps:$4 sm:$0xff]   ;;  %v101_v49 = vld [vmem:[#allocation2 + $0x8] sm:$0xff]  ;;  %v2925_v52 = vld [vmem:[#allocation5 + $0x148] ss:$16 sps:$4 sm:$0xff]  }
  0x6c   :  { %v2928_v50 = vld [vmem:[#allocation5 + $0x160] ss:$16 sps:$4 sm:$0xff]   ;;  %v108_v51 = vpack.c.bf16 %v101_v49, %v101_v49  ;;  %v2929_v53 = vld [vmem:[#allocation5 + $0x184] ss:$16 sps:$4 sm:$0xff]   ;;  %v2933_v54 = vld [vmem:[#allocation5 + $0x16c] ss:$16 sps:$4 sm:$0xff]  }
  0x6d   :  { %1325 = vmatpush1.bf16.msra.mxu0 %v2886_v22  ;;  %v2931_v55 = vld [vmem:[#allocation5 + $0x168] ss:$16 sps:$4 sm:$0xff]   ;;  %v2934_v56 = vld [vmem:[#allocation5 + $0x180] ss:$16 sps:$4 sm:$0xff]   ;;  %v2935_v57 = vld [vmem:[#allocation5 + $0x1a4] ss:$16 sps:$4 sm:$0xff]  }
  0x6e   :  { %1487 = vmatpush1.bf16.msra.mxu1 %v2883_v21  ;;  %1326 = vmatprep.subr.bf16.mxu0 %v2887_v23  ;;  %v2939_v58 = vld [vmem:[#allocation5 + $0x18c] ss:$16 sps:$4 sm:$0xff]   ;;  %v2937_v59 = vld [vmem:[#allocation5 + $0x188] ss:$16 sps:$4 sm:$0xff]   ;;  %v2940_v60 = vld [vmem:[#allocation5 + $0x1a0] ss:$16 sps:$4 sm:$0xff]  }
  0x6f   :  { %1488 = vmatprep.subr.bf16.mxu1 %v2891_v24  ;;  %1348 = vmatprep.mubr.bf16.mxu0 %v108_v51  ;;  %v2941_v61 = vld [vmem:[#allocation5 + $0x1c4] ss:$16 sps:$4 sm:$0xff]   ;;  %v2945_v62 = vld [vmem:[#allocation5 + $0x1ac] ss:$16 sps:$4 sm:$0xff]   ;;  %v2943_v63 = vld [vmem:[#allocation5 + $0x1a8] ss:$16 sps:$4 sm:$0xff]  }
  0x70   :  { %1512 = vmatprep.mubr.bf16.mxu1 %v108_v51  ;;  %v2946_v1 = vld [vmem:[#allocation5 + $0x1c0] ss:$16 sps:$4 sm:$0xff]   ;;  %v2947_v2 = vld [vmem:[#allocation5 + $0x1e4] ss:$16 sps:$4 sm:$0xff]   ;;  %v2951_v3 = vld [vmem:[#allocation5 + $0x1cc] ss:$16 sps:$4 sm:$0xff]  }
  0x71   :  { %1327 = vmatpush1.bf16.msra.mxu0 %v2892_v25  ;;  %v2949_v4 = vld [vmem:[#allocation5 + $0x1c8] ss:$16 sps:$4 sm:$0xff]   ;;  %v2952_v5 = vld [vmem:[#allocation5 + $0x1e0] ss:$16 sps:$4 sm:$0xff]   ;;  %v2955_v7 = vld [vmem:[#allocation5 + $0x204] ss:$16 sps:$4 sm:$0xff]  }
  0x72   :  { %1489 = vmatpush1.bf16.msra.mxu1 %v2889_v26  ;;  %1328 = vmatprep.subr.bf16.mxu0 %v2893_v27  ;;  %v100_v6 = vld [vmem:[#allocation2] sm:$0xff]  ;;  %v2953_v11 = vld [vmem:[#allocation5 + $0x200] ss:$16 sps:$4 sm:$0xff]   ;;  %v2961_v13 = vld [vmem:[#allocation5 + $0x224] ss:$16 sps:$4 sm:$0xff]  }
  0x73   :  { %1490 = vmatprep.subr.bf16.mxu1 %v2897_v28  ;;  %v2958_v8 = vld [vmem:[#allocation5 + $0x1ec] ss:$16 sps:$4 sm:$0xff]   ;;  %v107_v9 = vpack.c.bf16 %v100_v6, %v100_v6  ;;  %v2956_v12 = vld [vmem:[#allocation5 + $0x1e8] ss:$16 sps:$4 sm:$0xff]   ;;  %v2959_v15 = vld [vmem:[#allocation5 + $0x220] ss:$16 sps:$4 sm:$0xff]  }
  0x74   :  { %v2964_v14 = vld [vmem:[#allocation5 + $0x20c] ss:$16 sps:$4 sm:$0xff]   ;;  %v2962_v16 = vld [vmem:[#allocation5 + $0x208] ss:$16 sps:$4 sm:$0xff]   ;;  %v2967_v17 = vld [vmem:[#allocation5 + $0x244] ss:$16 sps:$4 sm:$0xff]  }
  0x75   :  { %1329 = vmatpush1.bf16.msra.mxu0 %v2898_v30  ;;  %v2970_v18 = vld [vmem:[#allocation5 + $0x22c] ss:$16 sps:$4 sm:$0xff]   ;;  %v2965_v19 = vld [vmem:[#allocation5 + $0x240] ss:$16 sps:$4 sm:$0xff]   ;;  %v2968_v20 = vld [vmem:[#allocation5 + $0x228] ss:$16 sps:$4 sm:$0xff]  }
  0x76   :  { %1491 = vmatpush1.bf16.msra.mxu1 %v2895_v29  ;;  %1330 = vmatprep.subr.bf16.mxu0 %v2899_v31  ;;  %v2973_v21 = vld [vmem:[#allocation5 + $0x264] ss:$16 sps:$4 sm:$0xff]   ;;  %v2976_v22 = vld [vmem:[#allocation5 + $0x24c] ss:$16 sps:$4 sm:$0xff]   ;;  %v2971_v23 = vld [vmem:[#allocation5 + $0x260] ss:$16 sps:$4 sm:$0xff]  }
  0x77   :  { %1492 = vmatprep.subr.bf16.mxu1 %v2903_v32  ;;  %v2974_v24 = vld [vmem:[#allocation5 + $0x248] ss:$16 sps:$4 sm:$0xff]   ;;  %v2979_v25 = vld [vmem:[#allocation5 + $0x284] ss:$16 sps:$4 sm:$0xff]   ;;  %v2982_v26 = vld [vmem:[#allocation5 + $0x26c] ss:$16 sps:$4 sm:$0xff]  }
  0x78   :  { %v2977_v27 = vld [vmem:[#allocation5 + $0x280] ss:$16 sps:$4 sm:$0xff]   ;;  %v2980_v28 = vld [vmem:[#allocation5 + $0x268] ss:$16 sps:$4 sm:$0xff]   ;;  %v2985_v29 = vld [vmem:[#allocation5 + $0x2a4] ss:$16 sps:$4 sm:$0xff]  }
  0x79   :  { %1331 = vmatpush1.bf16.msra.mxu0 %v2904_v33  ;;  %v2988_v30 = vld [vmem:[#allocation5 + $0x28c] ss:$16 sps:$4 sm:$0xff]   ;;  %v2983_v31 = vld [vmem:[#allocation5 + $0x2a0] ss:$16 sps:$4 sm:$0xff]   ;;  %v2986_v32 = vld [vmem:[#allocation5 + $0x288] ss:$16 sps:$4 sm:$0xff]  }
  0x7a   :  { %1493 = vmatpush1.bf16.msra.mxu1 %v2901_v34  ;;  %1332 = vmatprep.subr.bf16.mxu0 %v2905_v35  ;;  %v2991_v33 = vld [vmem:[#allocation5 + $0x2c4] ss:$16 sps:$4 sm:$0xff]   ;;  %v2994_v34 = vld [vmem:[#allocation5 + $0x2ac] ss:$16 sps:$4 sm:$0xff]   ;;  %v3007_v49 = vld [vmem:[#allocation5 + $0x320] ss:$16 sps:$4 sm:$0xff]  }
  0x7b   :  { %1494 = vmatprep.subr.bf16.mxu1 %v2909_v36  ;;  %v103_v35 = vld [vmem:[#allocation2 + $0x18] sm:$0xff] }
  0x7c   :  { %v110_v36 = vpack.c.bf16 %v103_v35, %v103_v35  ;;  %v3015_v51 = vld [vmem:[#allocation5 + $0x344] ss:$16 sps:$4 sm:$0xff]   ;;  %v3037_v6 = vld [vmem:[#allocation5 + $0x3c0] ss:$16 sps:$4 sm:$0xff]  }
  0x7d   :  { %1333 = vmatpush1.bf16.msra.mxu0 %v2910_v38  ;;  %v2992_v38 = vld [vmem:[#allocation5 + $0x2a8] ss:$16 sps:$4 sm:$0xff]   ;;  %v3073_v35 = vld [vmem:[#allocation5 + $0x480] ss:$16 sps:$4 sm:$0xff]  }
  0x7e   :  { %1495 = vmatpush1.bf16.msra.mxu1 %v2907_v37  ;;  %1334 = vmatprep.subr.bf16.mxu0 %v2911_v39  ;;  %v2989_v37 = vld [vmem:[#allocation5 + $0x2c0] ss:$16 sps:$4 sm:$0xff]   ;;  %v2997_v39 = vld [vmem:[#allocation5 + $0x2e4] ss:$16 sps:$4 sm:$0xff]  }
  0x7f   :  { %1496 = vmatprep.subr.bf16.mxu1 %v2915_v40  ;;  %v3000_v40 = vld [vmem:[#allocation5 + $0x2cc] ss:$16 sps:$4 sm:$0xff]  }
  0x81   :  { %1335 = vmatpush1.bf16.msra.mxu0 %v2916_v41  ;;  %v2995_v41 = vld [vmem:[#allocation5 + $0x2e0] ss:$16 sps:$4 sm:$0xff]  }
  0x82   :  { %1497 = vmatpush1.bf16.msra.mxu1 %v2913_v42  ;;  %1336 = vmatprep.subr.bf16.mxu0 %v2917_v43  ;;  %v2998_v42 = vld [vmem:[#allocation5 + $0x2c8] ss:$16 sps:$4 sm:$0xff]   ;;  %v3003_v43 = vld [vmem:[#allocation5 + $0x304] ss:$16 sps:$4 sm:$0xff]  }
  0x83   :  { %1498 = vmatprep.subr.bf16.mxu1 %v2921_v44  ;;  %v3006_v44 = vld [vmem:[#allocation5 + $0x2ec] ss:$16 sps:$4 sm:$0xff]  }
  0x85   :  { %1337 = vmatpush1.bf16.msra.mxu0 %v2922_v46  ;;  %v3004_v46 = vld [vmem:[#allocation5 + $0x2e8] ss:$16 sps:$4 sm:$0xff]  }
  0x86   :  { %1499 = vmatpush1.bf16.msra.mxu1 %v2919_v45  ;;  %1338 = vmatprep.subr.bf16.mxu0 %v2923_v47  ;;  %v3001_v45 = vld [vmem:[#allocation5 + $0x300] ss:$16 sps:$4 sm:$0xff]   ;;  %v3009_v47 = vld [vmem:[#allocation5 + $0x324] ss:$16 sps:$4 sm:$0xff]  }
  0x87   :  { %1500 = vmatprep.subr.bf16.mxu1 %v2927_v48  ;;  %v3012_v48 = vld [vmem:[#allocation5 + $0x30c] ss:$16 sps:$4 sm:$0xff]  }
  0x89   :  { %1339 = vmatpush1.bf16.msra.mxu0 %v2928_v50  ;;  %v3010_v50 = vld [vmem:[#allocation5 + $0x308] ss:$16 sps:$4 sm:$0xff]  }
  0x8a   :  { %1501 = vmatpush1.bf16.msra.mxu1 %v2925_v52  ;;  %1340 = vmatprep.subr.bf16.mxu0 %v2929_v53  ;;  %v3018_v52 = vld [vmem:[#allocation5 + $0x32c] ss:$16 sps:$4 sm:$0xff]   ;;  %v3013_v53 = vld [vmem:[#allocation5 + $0x340] ss:$16 sps:$4 sm:$0xff]  }
  0x8b   :  { %1502 = vmatprep.subr.bf16.mxu1 %v2933_v54  ;;  %v3016_v54 = vld [vmem:[#allocation5 + $0x328] ss:$16 sps:$4 sm:$0xff]  }
  0x8d   :  { %1341 = vmatpush1.bf16.msra.mxu0 %v2934_v56  ;;  %v3024_v56 = vld [vmem:[#allocation5 + $0x34c] ss:$16 sps:$4 sm:$0xff]  }
  0x8e   :  { %1503 = vmatpush1.bf16.msra.mxu1 %v2931_v55  ;;  %1342 = vmatprep.subr.bf16.mxu0 %v2935_v57  ;;  %v3021_v55 = vld [vmem:[#allocation5 + $0x364] ss:$16 sps:$4 sm:$0xff]   ;;  %v3019_v57 = vld [vmem:[#allocation5 + $0x360] ss:$16 sps:$4 sm:$0xff]  }
  0x8f   :  { %1504 = vmatprep.subr.bf16.mxu1 %v2939_v58  ;;  %v3022_v58 = vld [vmem:[#allocation5 + $0x348] ss:$16 sps:$4 sm:$0xff]  }
  0x91   :  { %1343 = vmatpush1.bf16.msra.mxu0 %v2940_v60  ;;  %v3030_v60 = vld [vmem:[#allocation5 + $0x36c] ss:$16 sps:$4 sm:$0xff]  }
  0x92   :  { %1505 = vmatpush1.bf16.msra.mxu1 %v2937_v59  ;;  %1344 = vmatprep.subr.bf16.mxu0 %v2941_v61  ;;  %v3027_v59 = vld [vmem:[#allocation5 + $0x384] ss:$16 sps:$4 sm:$0xff]   ;;  %v3025_v61 = vld [vmem:[#allocation5 + $0x380] ss:$16 sps:$4 sm:$0xff]  }
  0x93   :  { %1506 = vmatprep.subr.bf16.mxu1 %v2945_v62  ;;  %v3028_v62 = vld [vmem:[#allocation5 + $0x368] ss:$16 sps:$4 sm:$0xff]  }
  0x95   :  { %1345 = vmatpush1.bf16.msra.mxu0 %v2946_v1  ;;  %v3036_v1 = vld [vmem:[#allocation5 + $0x38c] ss:$16 sps:$4 sm:$0xff]  }
  0x96   :  { %1507 = vmatpush1.bf16.msra.mxu1 %v2943_v63  ;;  %1346 = vmatprep.subr.bf16.mxu0 %v2947_v2  ;;  %v3033_v63 = vld [vmem:[#allocation5 + $0x3a4] ss:$16 sps:$4 sm:$0xff]   ;;  %v3031_v2 = vld [vmem:[#allocation5 + $0x3a0] ss:$16 sps:$4 sm:$0xff]  }
  0x97   :  { %1508 = vmatprep.subr.bf16.mxu1 %v2951_v3  ;;  %v3034_v3 = vld [vmem:[#allocation5 + $0x388] ss:$16 sps:$4 sm:$0xff]  }
  0x99   :  { %1347 = vmatpush1.bf16.msra.mxu0 %v2952_v5  ;;  %v3042_v5 = vld [vmem:[#allocation5 + $0x3ac] ss:$16 sps:$4 sm:$0xff]  }
  0x9a   :  { %1509 = vmatpush1.bf16.msra.mxu1 %v2949_v4  ;;  %1357 = vmatprep.subr.bf16.mxu0 %v2955_v7  ;;  %v3039_v4 = vld [vmem:[#allocation5 + $0x3c4] ss:$16 sps:$4 sm:$0xff]   ;;  %v3040_v7 = vld [vmem:[#allocation5 + $0x3a8] ss:$16 sps:$4 sm:$0xff]  }
  0x9b   :  { %1510 = vmatprep.subr.bf16.mxu1 %v2958_v8  ;;  %v3045_v8 = vld [vmem:[#allocation5 + $0x3e4] ss:$16 sps:$4 sm:$0xff]  }
  0x9c   :  { %1349 = vmatmul.mubr.bf16.vlgmr.msra.gmra.mrb[0].mxu0 %v107_v9 }
  0x9d   :  { %1358 = vmatpush1.bf16.msra.mxu0 %v2953_v11  ;;  %1389 = vmatprep.mubr.bf16.mxu0 %v110_v36  ;;  %v3043_v11 = vld [vmem:[#allocation5 + $0x3e0] ss:$16 sps:$4 sm:$0xff]  }
  0x9e   :  { %1511 = vmatpush1.bf16.msra.mxu1 %v2956_v12  ;;  %1359 = vmatprep.subr.bf16.mxu0 %v2961_v13  ;;  %v102_v12 = vld [vmem:[#allocation2 + $0x10] sm:$0xff] }
  0x9f   :  { %1521 = vmatprep.subr.bf16.mxu1 %v2964_v14  ;;  %v3046_v13 = vld [vmem:[#allocation5 + $0x3c8] ss:$16 sps:$4 sm:$0xff]   ;;  %v3051_v14 = vld [vmem:[#allocation5 + $0x404] ss:$16 sps:$4 sm:$0xff]  }
  0xa1   :  { %1360 = vmatpush1.bf16.msra.mxu0 %v2959_v15  ;;  %1513 = vmatmul.mubr.bf16.vlgmr.msra.gmra.mrb[4].mxu1 %v107_v9  ;;  %v3048_v9 = vld [vmem:[#allocation5 + $0x3cc] ss:$16 sps:$4 sm:$0xff]  }
  0xa2   :  { %1522 = vmatpush1.bf16.msra.mxu1 %v2962_v16  ;;  %1361 = vmatprep.subr.bf16.mxu0 %v2967_v17  ;;  %v3054_v15 = vld [vmem:[#allocation5 + $0x3ec] ss:$16 sps:$4 sm:$0xff]   ;;  %v109_v16 = vpack.c.bf16 %v102_v12, %v102_v12  ;;  %v3049_v17 = vld [vmem:[#allocation5 + $0x400] ss:$16 sps:$4 sm:$0xff]  }
  0xa3   :  { %1523 = vmatprep.subr.bf16.mxu1 %v2970_v18  ;;  %1553 = vmatprep.mubr.bf16.mxu1 %v110_v36  ;;  %v3052_v18 = vld [vmem:[#allocation5 + $0x3e8] ss:$16 sps:$4 sm:$0xff]   ;;  %v3138_v12 = vld [vmem:[#allocation5 + $0x5ac] ss:$16 sps:$4 sm:$0xff]  }
  0xa4   :  { %v3076_v36 = vld [vmem:[#allocation5 + $0x468] ss:$16 sps:$4 sm:$0xff]  }
  0xa5   :  { %1362 = vmatpush1.bf16.msra.mxu0 %v2965_v19  ;;  %v3057_v19 = vld [vmem:[#allocation5 + $0x424] ss:$16 sps:$4 sm:$0xff]  }
  0xa6   :  { %1524 = vmatpush1.bf16.msra.mxu1 %v2968_v20  ;;  %1363 = vmatprep.subr.bf16.mxu0 %v2973_v21  ;;  %v105_v20 = vld [vmem:[#allocation2 + $0x28] sm:$0xff]  ;;  %v3060_v21 = vld [vmem:[#allocation5 + $0x40c] ss:$16 sps:$4 sm:$0xff]  }
  0xa7   :  { %1525 = vmatprep.subr.bf16.mxu1 %v2976_v22  ;;  %v112_v22 = vpack.c.bf16 %v105_v20, %v105_v20  ;;  %v3153_v20 = vld [vmem:[#allocation7 + $0x4] ss:$8 sps:$4 sm:$0xff]  }
  0xa9   :  { %1364 = vmatpush1.bf16.msra.mxu0 %v2971_v23  ;;  %v3055_v23 = vld [vmem:[#allocation5 + $0x420] ss:$16 sps:$4 sm:$0xff]  }
  0xaa   :  { %1526 = vmatpush1.bf16.msra.mxu1 %v2974_v24  ;;  %1365 = vmatprep.subr.bf16.mxu0 %v2979_v25  ;;  %v3058_v24 = vld [vmem:[#allocation5 + $0x408] ss:$16 sps:$4 sm:$0xff]   ;;  %v3063_v25 = vld [vmem:[#allocation5 + $0x444] ss:$16 sps:$4 sm:$0xff]  }
  0xab   :  { %1527 = vmatprep.subr.bf16.mxu1 %v2982_v26  ;;  %v3066_v26 = vld [vmem:[#allocation5 + $0x42c] ss:$16 sps:$4 sm:$0xff]  }
  0xad   :  { %1366 = vmatpush1.bf16.msra.mxu0 %v2977_v27  ;;  %v3061_v27 = vld [vmem:[#allocation5 + $0x440] ss:$16 sps:$4 sm:$0xff]  }
  0xae   :  { %1528 = vmatpush1.bf16.msra.mxu1 %v2980_v28  ;;  %1367 = vmatprep.subr.bf16.mxu0 %v2985_v29  ;;  %v3064_v28 = vld [vmem:[#allocation5 + $0x428] ss:$16 sps:$4 sm:$0xff]   ;;  %v3069_v29 = vld [vmem:[#allocation5 + $0x464] ss:$16 sps:$4 sm:$0xff]  }
  0xaf   :  { %1529 = vmatprep.subr.bf16.mxu1 %v2988_v30  ;;  %v3072_v30 = vld [vmem:[#allocation5 + $0x44c] ss:$16 sps:$4 sm:$0xff]  }
  0xb1   :  { %1368 = vmatpush1.bf16.msra.mxu0 %v2983_v31  ;;  %v3067_v31 = vld [vmem:[#allocation5 + $0x460] ss:$16 sps:$4 sm:$0xff]  }
  0xb2   :  { %1530 = vmatpush1.bf16.msra.mxu1 %v2986_v32  ;;  %1369 = vmatprep.subr.bf16.mxu0 %v2991_v33  ;;  %v3070_v32 = vld [vmem:[#allocation5 + $0x448] ss:$16 sps:$4 sm:$0xff]   ;;  %v3075_v33 = vld [vmem:[#allocation5 + $0x484] ss:$16 sps:$4 sm:$0xff]  }
  0xb3   :  { %1531 = vmatprep.subr.bf16.mxu1 %v2994_v34  ;;  %v3078_v34 = vld [vmem:[#allocation5 + $0x46c] ss:$16 sps:$4 sm:$0xff]  }
  0xb5   :  { %1370 = vmatpush1.bf16.msra.mxu0 %v2989_v37  ;;  %v3081_v37 = vld [vmem:[#allocation5 + $0x4a4] ss:$16 sps:$4 sm:$0xff]  }
  0xb6   :  { %1532 = vmatpush1.bf16.msra.mxu1 %v2992_v38  ;;  %1371 = vmatprep.subr.bf16.mxu0 %v2997_v39  ;;  %v3079_v38 = vld [vmem:[#allocation5 + $0x4a0] ss:$16 sps:$4 sm:$0xff]   ;;  %v3084_v39 = vld [vmem:[#allocation5 + $0x48c] ss:$16 sps:$4 sm:$0xff]  }
  0xb7   :  { %1533 = vmatprep.subr.bf16.mxu1 %v3000_v40  ;;  %v3082_v40 = vld [vmem:[#allocation5 + $0x488] ss:$16 sps:$4 sm:$0xff]  }
  0xb9   :  { %1372 = vmatpush1.bf16.msra.mxu0 %v2995_v41  ;;  %v3087_v41 = vld [vmem:[#allocation5 + $0x4c4] ss:$16 sps:$4 sm:$0xff]  }
  0xba   :  { %1534 = vmatpush1.bf16.msra.mxu1 %v2998_v42  ;;  %1373 = vmatprep.subr.bf16.mxu0 %v3003_v43  ;;  %v3090_v42 = vld [vmem:[#allocation5 + $0x4ac] ss:$16 sps:$4 sm:$0xff]   ;;  %v3085_v43 = vld [vmem:[#allocation5 + $0x4c0] ss:$16 sps:$4 sm:$0xff]  }
  0xbb   :  { %1535 = vmatprep.subr.bf16.mxu1 %v3006_v44  ;;  %v3088_v44 = vld [vmem:[#allocation5 + $0x4a8] ss:$16 sps:$4 sm:$0xff]  }
  0xbd   :  { %1374 = vmatpush1.bf16.msra.mxu0 %v3001_v45  ;;  %v3093_v45 = vld [vmem:[#allocation5 + $0x4e4] ss:$16 sps:$4 sm:$0xff]  }
  0xbe   :  { %1536 = vmatpush1.bf16.msra.mxu1 %v3004_v46  ;;  %1375 = vmatprep.subr.bf16.mxu0 %v3009_v47  ;;  %v3096_v46 = vld [vmem:[#allocation5 + $0x4cc] ss:$16 sps:$4 sm:$0xff]   ;;  %v3091_v47 = vld [vmem:[#allocation5 + $0x4e0] ss:$16 sps:$4 sm:$0xff]  }
  0xbf   :  { %1537 = vmatprep.subr.bf16.mxu1 %v3012_v48  ;;  %v3094_v48 = vld [vmem:[#allocation5 + $0x4c8] ss:$16 sps:$4 sm:$0xff]  }
  0xc1   :  { %1376 = vmatpush1.bf16.msra.mxu0 %v3007_v49  ;;  %v3099_v49 = vld [vmem:[#allocation5 + $0x504] ss:$16 sps:$4 sm:$0xff]  }
  0xc2   :  { %1538 = vmatpush1.bf16.msra.mxu1 %v3010_v50  ;;  %1377 = vmatprep.subr.bf16.mxu0 %v3015_v51  ;;  %v3102_v50 = vld [vmem:[#allocation5 + $0x4ec] ss:$16 sps:$4 sm:$0xff]   ;;  %v3097_v51 = vld [vmem:[#allocation5 + $0x500] ss:$16 sps:$4 sm:$0xff]  }
  0xc3   :  { %1539 = vmatprep.subr.bf16.mxu1 %v3018_v52  ;;  %v3100_v52 = vld [vmem:[#allocation5 + $0x4e8] ss:$16 sps:$4 sm:$0xff]  }
  0xc5   :  { %1378 = vmatpush1.bf16.msra.mxu0 %v3013_v53  ;;  %v3105_v53 = vld [vmem:[#allocation5 + $0x524] ss:$16 sps:$4 sm:$0xff]  }
  0xc6   :  { %1540 = vmatpush1.bf16.msra.mxu1 %v3016_v54  ;;  %1379 = vmatprep.subr.bf16.mxu0 %v3021_v55  ;;  %v3108_v54 = vld [vmem:[#allocation5 + $0x50c] ss:$16 sps:$4 sm:$0xff]   ;;  %v3103_v55 = vld [vmem:[#allocation5 + $0x520] ss:$16 sps:$4 sm:$0xff]  }
  0xc7   :  { %1541 = vmatprep.subr.bf16.mxu1 %v3024_v56  ;;  %v3106_v56 = vld [vmem:[#allocation5 + $0x508] ss:$16 sps:$4 sm:$0xff]  }
  0xc9   :  { %1380 = vmatpush1.bf16.msra.mxu0 %v3019_v57  ;;  %v3111_v57 = vld [vmem:[#allocation5 + $0x544] ss:$16 sps:$4 sm:$0xff]  }
  0xca   :  { %1542 = vmatpush1.bf16.msra.mxu1 %v3022_v58  ;;  %1381 = vmatprep.subr.bf16.mxu0 %v3027_v59  ;;  %v3114_v58 = vld [vmem:[#allocation5 + $0x52c] ss:$16 sps:$4 sm:$0xff]   ;;  %v3109_v59 = vld [vmem:[#allocation5 + $0x540] ss:$16 sps:$4 sm:$0xff]  }
  0xcb   :  { %1543 = vmatprep.subr.bf16.mxu1 %v3030_v60  ;;  %v3112_v60 = vld [vmem:[#allocation5 + $0x528] ss:$16 sps:$4 sm:$0xff]  }
  0xcd   :  { %1382 = vmatpush1.bf16.msra.mxu0 %v3025_v61  ;;  %v3117_v61 = vld [vmem:[#allocation5 + $0x564] ss:$16 sps:$4 sm:$0xff]  }
  0xce   :  { %1544 = vmatpush1.bf16.msra.mxu1 %v3028_v62  ;;  %1383 = vmatprep.subr.bf16.mxu0 %v3033_v63  ;;  %v3120_v62 = vld [vmem:[#allocation5 + $0x54c] ss:$16 sps:$4 sm:$0xff]   ;;  %v3115_v63 = vld [vmem:[#allocation5 + $0x560] ss:$16 sps:$4 sm:$0xff]  }
  0xcf   :  { %1545 = vmatprep.subr.bf16.mxu1 %v3036_v1  ;;  %v3118_v1 = vld [vmem:[#allocation5 + $0x548] ss:$16 sps:$4 sm:$0xff]  }
  0xd1   :  { %1384 = vmatpush1.bf16.msra.mxu0 %v3031_v2  ;;  %v3123_v2 = vld [vmem:[#allocation5 + $0x584] ss:$16 sps:$4 sm:$0xff]  }
  0xd2   :  { %1546 = vmatpush1.bf16.msra.mxu1 %v3034_v3  ;;  %1385 = vmatprep.subr.bf16.mxu0 %v3039_v4  ;;  %v3126_v3 = vld [vmem:[#allocation5 + $0x56c] ss:$16 sps:$4 sm:$0xff]   ;;  %v3121_v4 = vld [vmem:[#allocation5 + $0x580] ss:$16 sps:$4 sm:$0xff]  }
  0xd3   :  { %1547 = vmatprep.subr.bf16.mxu1 %v3042_v5  ;;  %v3124_v5 = vld [vmem:[#allocation5 + $0x568] ss:$16 sps:$4 sm:$0xff]  }
  0xd5   :  { %1386 = vmatpush1.bf16.msra.mxu0 %v3037_v6  ;;  %v3129_v6 = vld [vmem:[#allocation5 + $0x5a4] ss:$16 sps:$4 sm:$0xff]  }
  0xd6   :  { %1548 = vmatpush1.bf16.msra.mxu1 %v3040_v7  ;;  %1387 = vmatprep.subr.bf16.mxu0 %v3045_v8  ;;  %v3132_v7 = vld [vmem:[#allocation5 + $0x58c] ss:$16 sps:$4 sm:$0xff]   ;;  %v3127_v8 = vld [vmem:[#allocation5 + $0x5a0] ss:$16 sps:$4 sm:$0xff]  }
  0xd7   :  { %1549 = vmatprep.subr.bf16.mxu1 %v3048_v9  ;;  %v3130_v9 = vld [vmem:[#allocation5 + $0x588] ss:$16 sps:$4 sm:$0xff]  }
  0xd9   :  { %1388 = vmatpush1.bf16.msra.mxu0 %v3043_v11  ;;  %v3135_v11 = vld [vmem:[#allocation5 + $0x5c4] ss:$16 sps:$4 sm:$0xff]  }
  0xda   :  { %1550 = vmatpush1.bf16.msra.mxu1 %v3046_v13  ;;  %1398 = vmatprep.subr.bf16.mxu0 %v3051_v14  ;;  %v3133_v13 = vld [vmem:[#allocation5 + $0x5c0] ss:$16 sps:$4 sm:$0xff]   ;;  %v3136_v14 = vld [vmem:[#allocation5 + $0x5a8] ss:$16 sps:$4 sm:$0xff]  }
  0xdb   :  { %1551 = vmatprep.subr.bf16.mxu1 %v3054_v15  ;;  %v3141_v15 = vld [vmem:[#allocation5 + $0x5e4] ss:$16 sps:$4 sm:$0xff]  }
  0xdc   :  { %1390 = vmatmul.mubr.bf16.vlgmr.msra.gmra.mrb[0].mxu0 %v109_v16 }
  0xdd   :  { %1399 = vmatpush1.bf16.msra.mxu0 %v3049_v17  ;;  %1430 = vmatprep.mubr.bf16.mxu0 %v112_v22  ;;  %v3139_v17 = vld [vmem:[#allocation5 + $0x5e0] ss:$16 sps:$4 sm:$0xff]  }
  0xde   :  { %1552 = vmatpush1.bf16.msra.mxu1 %v3052_v18  ;;  %1400 = vmatprep.subr.bf16.mxu0 %v3057_v19  ;;  %v104_v18 = vld [vmem:[#allocation2 + $0x20] sm:$0xff] }
  0xdf   :  { %1562 = vmatprep.subr.bf16.mxu1 %v3060_v21  ;;  %v3142_v19 = vld [vmem:[#allocation5 + $0x5c8] ss:$16 sps:$4 sm:$0xff]   ;;  %v3147_v21 = vld [vmem:[#allocation5 + $0x5ec] ss:$16 sps:$4 sm:$0xff]  }
  0xe1   :  { %1401 = vmatpush1.bf16.msra.mxu0 %v3055_v23  ;;  %1554 = vmatmul.mubr.bf16.vlgmr.msra.gmra.mrb[4].mxu1 %v109_v16  ;;  %v3144_v16 = vld [vmem:[#allocation5 + $0x5cc] ss:$16 sps:$4 sm:$0xff]   ;;  %v3151_v23 = vld [vmem:[#allocation7] ss:$8 sps:$4 sm:$0xff]  }
  0xe2   :  { %1563 = vmatpush1.bf16.msra.mxu1 %v3058_v24  ;;  %1402 = vmatprep.subr.bf16.mxu0 %v3063_v25  ;;  %v3145_v24 = vld [vmem:[#allocation5 + $0x5e8] ss:$16 sps:$4 sm:$0xff]   ;;  %v3156_v25 = vld [vmem:[#allocation7 + $0x14] ss:$8 sps:$4 sm:$0xff]  }
  0xe3   :  { %1564 = vmatprep.subr.bf16.mxu1 %v3066_v26  ;;  %1594 = vmatprep.mubr.bf16.mxu1 %v112_v22  ;;  %v111_v22 = vpack.c.bf16 %v104_v18, %v104_v18  ;;  %v3150_v26 = vld [vmem:[#allocation5 + $0x60c] ss:$16 sps:$4 sm:$0xff]  }
  0xe5   :  { %1403 = vmatpush1.bf16.msra.mxu0 %v3061_v27  ;;  %v3154_v27 = vld [vmem:[#allocation7 + $0x10] ss:$8 sps:$4 sm:$0xff]  }
  0xe6   :  { %1565 = vmatpush1.bf16.msra.mxu1 %v3064_v28  ;;  %1404 = vmatprep.subr.bf16.mxu0 %v3069_v29  ;;  %v3148_v28 = vld [vmem:[#allocation5 + $0x608] ss:$16 sps:$4 sm:$0xff]   ;;  %v3159_v29 = vld [vmem:[#allocation7 + $0x24] ss:$8 sps:$4 sm:$0xff]  }
  0xe7   :  { %1566 = vmatprep.subr.bf16.mxu1 %v3072_v30  ;;  %v3157_v30 = vld [vmem:[#allocation7 + $0x20] ss:$8 sps:$4 sm:$0xff]  }
  0xe9   :  { %1405 = vmatpush1.bf16.msra.mxu0 %v3067_v31  ;;  %v3162_v31 = vld [vmem:[#allocation7 + $0x34] ss:$8 sps:$4 sm:$0xff]  }
  0xea   :  { %1567 = vmatpush1.bf16.msra.mxu1 %v3070_v32  ;;  %1406 = vmatprep.subr.bf16.mxu0 %v3075_v33  ;;  %v3160_v32 = vld [vmem:[#allocation7 + $0x30] ss:$8 sps:$4 sm:$0xff]   ;;  %v3165_v33 = vld [vmem:[#allocation7 + $0x44] ss:$8 sps:$4 sm:$0xff]  }
  0xeb   :  { %1568 = vmatprep.subr.bf16.mxu1 %v3078_v34  ;;  %v3163_v34 = vld [vmem:[#allocation7 + $0x40] ss:$8 sps:$4 sm:$0xff]  }
  0xed   :  { %1407 = vmatpush1.bf16.msra.mxu0 %v3073_v35  ;;  %v3168_v35 = vld [vmem:[#allocation7 + $0x54] ss:$8 sps:$4 sm:$0xff]  }
  0xee   :  { %1569 = vmatpush1.bf16.msra.mxu1 %v3076_v36  ;;  %1408 = vmatprep.subr.bf16.mxu0 %v3081_v37  ;;  %v3166_v36 = vld [vmem:[#allocation7 + $0x50] ss:$8 sps:$4 sm:$0xff]   ;;  %v3171_v37 = vld [vmem:[#allocation7 + $0x64] ss:$8 sps:$4 sm:$0xff]  }
  0xef   :  { %1570 = vmatprep.subr.bf16.mxu1 %v3084_v39 }
  0xf1   :  { %1409 = vmatpush1.bf16.msra.mxu0 %v3079_v38  ;;  %v3169_v38 = vld [vmem:[#allocation7 + $0x60] ss:$8 sps:$4 sm:$0xff]  }
  0xf2   :  { %1571 = vmatpush1.bf16.msra.mxu1 %v3082_v40  ;;  %1410 = vmatprep.subr.bf16.mxu0 %v3087_v41  ;;  %v3172_v41 = vld [vmem:[#allocation7 + $0x70] ss:$8 sps:$4 sm:$0xff]  }
  0xf3   :  { %1572 = vmatprep.subr.bf16.mxu1 %v3090_v42 }
  0xf5   :  { %1411 = vmatpush1.bf16.msra.mxu0 %v3085_v43  ;;  %v3177_v43 = vld [vmem:[#allocation7 + $0x84] ss:$8 sps:$4 sm:$0xff]  }
  0xf6   :  { %1573 = vmatpush1.bf16.msra.mxu1 %v3088_v44  ;;  %1412 = vmatprep.subr.bf16.mxu0 %v3093_v45  ;;  %v3175_v45 = vld [vmem:[#allocation7 + $0x80] ss:$8 sps:$4 sm:$0xff]  }
  0xf7   :  { %1574 = vmatprep.subr.bf16.mxu1 %v3096_v46  ;;  %v3178_v46 = vld [vmem:[#allocation7 + $0x90] ss:$8 sps:$4 sm:$0xff]  }
  0xf9   :  { %1413 = vmatpush1.bf16.msra.mxu0 %v3091_v47  ;;  %v3183_v47 = vld [vmem:[#allocation7 + $0xa4] ss:$8 sps:$4 sm:$0xff]  }
  0xfa   :  { %1575 = vmatpush1.bf16.msra.mxu1 %v3094_v48  ;;  %1414 = vmatprep.subr.bf16.mxu0 %v3099_v49  ;;  %v3181_v48 = vld [vmem:[#allocation7 + $0xa0] ss:$8 sps:$4 sm:$0xff]   ;;  %v3186_v49 = vld [vmem:[#allocation7 + $0xb4] ss:$8 sps:$4 sm:$0xff]  }
  0xfb   :  { %1576 = vmatprep.subr.bf16.mxu1 %v3102_v50  ;;  %v3184_v50 = vld [vmem:[#allocation7 + $0xb0] ss:$8 sps:$4 sm:$0xff]  }
  0xfd   :  { %1415 = vmatpush1.bf16.msra.mxu0 %v3097_v51  ;;  %v3189_v51 = vld [vmem:[#allocation7 + $0xc4] ss:$8 sps:$4 sm:$0xff]  }
  0xfe   :  { %1577 = vmatpush1.bf16.msra.mxu1 %v3100_v52  ;;  %1416 = vmatprep.subr.bf16.mxu0 %v3105_v53  ;;  %v3187_v52 = vld [vmem:[#allocation7 + $0xc0] ss:$8 sps:$4 sm:$0xff]   ;;  %v3192_v53 = vld [vmem:[#allocation7 + $0xd4] ss:$8 sps:$4 sm:$0xff]  }
  0xff   :  { %1578 = vmatprep.subr.bf16.mxu1 %v3108_v54  ;;  %v3190_v54 = vld [vmem:[#allocation7 + $0xd0] ss:$8 sps:$4 sm:$0xff]  }
 0x101   :  { %1417 = vmatpush1.bf16.msra.mxu0 %v3103_v55  ;;  %v3195_v55 = vld [vmem:[#allocation7 + $0xe4] ss:$8 sps:$4 sm:$0xff]  }
 0x102   :  { %1579 = vmatpush1.bf16.msra.mxu1 %v3106_v56  ;;  %1418 = vmatprep.subr.bf16.mxu0 %v3111_v57  ;;  %v3193_v56 = vld [vmem:[#allocation7 + $0xe0] ss:$8 sps:$4 sm:$0xff]   ;;  %v3198_v57 = vld [vmem:[#allocation7 + $0xf4] ss:$8 sps:$4 sm:$0xff]  }
 0x103   :  { %1580 = vmatprep.subr.bf16.mxu1 %v3114_v58  ;;  %v3196_v58 = vld [vmem:[#allocation7 + $0xf0] ss:$8 sps:$4 sm:$0xff]  }
 0x105   :  { %1419 = vmatpush1.bf16.msra.mxu0 %v3109_v59  ;;  %v3201_v59 = vld [vmem:[#allocation7 + $0x104] ss:$8 sps:$4 sm:$0xff]  }
 0x106   :  { %1581 = vmatpush1.bf16.msra.mxu1 %v3112_v60  ;;  %1420 = vmatprep.subr.bf16.mxu0 %v3117_v61  ;;  %v3247_v60 = vld [vmem:[#allocation8 + $0x40] sm:$0xff]  }
 0x107   :  { %1582 = vmatprep.subr.bf16.mxu1 %v3120_v62  ;;  %v3248_v61 = vld [vmem:[#allocation8] sm:$0xff]   ;;  %v3249_v62 = vld [vmem:[#allocation8 + $0x48] sm:$0xff]  }
 0x109   :  { %1421 = vmatpush1.bf16.msra.mxu0 %v3115_v63  ;;  %v3250_v63 = vld [vmem:[#allocation8 + $0x8] sm:$0xff]  }
 0x10a   :  { %1583 = vmatpush1.bf16.msra.mxu1 %v3118_v1  ;;  %1422 = vmatprep.subr.bf16.mxu0 %v3123_v2  ;;  %v312_v1 = vlaneseq }
 0x10b   :  { %1584 = vmatprep.subr.bf16.mxu1 %v3126_v3 }
 0x10c   :  { %v3577_v2 = vshrl.u32 %v312_v1, 7  ;;  %v3237_v1 = vld [vmem:[#allocation7 + $0x1c4] ss:$8 sps:$4 sm:$0xff]  }
 0x10d   :  { %1423 = vmatpush1.bf16.msra.mxu0 %v3121_v4  ;;  %v3583_v4 = vld [vmem:[%s3624_s2] sm:$0xf] }
 0x10e   :  { %1585 = vmatpush1.bf16.msra.mxu1 %v3124_v5  ;;  %1424 = vmatprep.subr.bf16.mxu0 %v3129_v6  ;;  %v314_v3 = vsub.s32 0, %v3577_v2  ;;  %v318_v5 = vsub.s32 1, %v3577_v2 }
 0x10f   :  { %1586 = vmatprep.subr.bf16.mxu1 %v3132_v7 }
 0x110   :  { %v315_v6 = vrot.slane %v3583_v4, %v314_v3  ;;  %v319_v7 = vrot.slane %v3583_v4, %v318_v5 }
 0x111   :  { %1425 = vmatpush1.bf16.msra.mxu0 %v3127_v8 }
 0x112   :  { %1587 = vmatpush1.bf16.msra.mxu1 %v3130_v9  ;;  %1426 = vmatprep.subr.bf16.mxu0 %v3135_v11 }
 0x113   :  { %1588 = vmatprep.subr.bf16.mxu1 %v3138_v12 }
 0x115   :  { %1427 = vmatpush1.bf16.msra.mxu0 %v3133_v13 }
 0x116   :  { %1589 = vmatpush1.bf16.msra.mxu1 %v3136_v14  ;;  %1428 = vmatprep.subr.bf16.mxu0 %v3141_v15 }
 0x117   :  { %1590 = vmatprep.subr.bf16.mxu1 %v3144_v16 }
 0x119   :  { %1429 = vmatpush1.bf16.msra.mxu0 %v3139_v17 }
 0x11a   :  { %1591 = vmatpush1.bf16.msra.mxu1 %v3142_v19  ;;  %2060 = vmatprep.subr.bf16.mxu0 %v3153_v20  ;;  %v326_v19 = vsub.s32 3, %v3577_v2 }
 0x11b   :  { %1592 = vmatprep.subr.bf16.mxu1 %v3147_v21 }
 0x11c   :  { %1431 = vmatmul.mubr.bf16.vlgmr.msra.gmra.mrb[0].mxu0 %v111_v22  ;;  %v327_v20 = vrot.slane %v3583_v4, %v326_v19  ;;  %v3253_v19 = vld [vmem:[#allocation8 + $0x58] sm:$0xff]  }
 0x11d   :  { %2061 = vmatpush1.bf16.msra.mxu0 %v3151_v23 }
 0x11e   :  { %1593 = vmatpush1.bf16.msra.mxu1 %v3145_v24  ;;  %2062 = vmatprep.subr.bf16.mxu0 %v3156_v25 }
 0x11f   :  { %1603 = vmatprep.subr.bf16.mxu1 %v3150_v26 }
 0x121   :  { %1595 = vmatmul.mubr.bf16.vlgmr.msra.gmra.mrb[4].mxu1 %v111_v22  ;;  %2063 = vmatpush1.bf16.msra.mxu0 %v3154_v27 }
 0x122   :  { %1604 = vmatpush1.bf16.msra.mxu1 %v3148_v28  ;;  %1635 = vmatprep.mubr.bf16.mxu1 %v3440_v0  ;;  %v3174_v0 = vld [vmem:[#allocation7 + $0x74] ss:$8 sps:$4 sm:$0xff]  }
 0x123   :  { %2064 = vmatprep.subr.bf16.mxu0 %v3159_v29  ;;  %2759 = vmatprep.subr.bf16.mxu1 %v3247_v60 }
 0x125   :  { %2065 = vmatpush1.bf16.msra.mxu0 %v3157_v30 }
 0x126   :  { %2066 = vmatprep.subr.bf16.mxu0 %v3162_v31 }
 0x129   :  { %2067 = vmatpush1.bf16.msra.mxu0 %v3160_v32 }
 0x12a   :  { %2068 = vmatprep.subr.bf16.mxu0 %v3165_v33 }
 0x12d   :  { %2668 = vmatmul.mubr.msk.bf16.vlgmr.msra.gmra.mrb[4].mxu1 %vm1312_vm0, %v3568_v10  ;;  %2069 = vmatpush1.bf16.msra.mxu0 %v3163_v34  ;;  %v3180_v10 = vld [vmem:[#allocation7 + $0x94] ss:$8 sps:$4 sm:$0xff]   ;;  %v3199_v34 = vld [vmem:[#allocation7 + $0x100] ss:$8 sps:$4 sm:$0xff]  }
 0x12e   :  { %2070 = vmatprep.subr.bf16.mxu0 %v3168_v35  ;;  %2760 = vmatpush3.bf16.msra.mxu1 %v3248_v61  ;;  %v3229_v61 = vld [vmem:[#allocation7 + $0x1a0] ss:$8 sps:$4 sm:$0xff]  }
 0x12f   :  { %2761 = vmatprep.subr.bf16.mxu1 %v3249_v62  ;;  %v3234_v62 = vld [vmem:[#allocation7 + $0x1b4] ss:$8 sps:$4 sm:$0xff]  }
 0x131   :  { %2071 = vmatpush1.bf16.msra.mxu0 %v3166_v36  ;;  %v3204_v36 = vld [vmem:[#allocation7 + $0x114] ss:$8 sps:$4 sm:$0xff]  }
 0x132   :  { %2072 = vmatprep.subr.bf16.mxu0 %v3171_v37  ;;  %2762 = vmatpush3.bf16.msra.mxu1 %v3250_v63  ;;  %v3202_v37 = vld [vmem:[#allocation7 + $0x110] ss:$8 sps:$4 sm:$0xff]  }
 0x133   :  { %v3232_v63 = vld [vmem:[#allocation7 + $0x1b0] ss:$8 sps:$4 sm:$0xff]  }
 0x134   :  { %v1473_v39 = vpop.f32.mrb[0].mxu1 }
 0x135   :  { %v3575_v40 = vpop.f32.mrb[1].mxu1  ;;  %2073 = vmatpush1.bf16.msra.mxu0 %v3169_v38  ;;  %v3207_v38 = vld [vmem:[#allocation7 + $0x124] ss:$8 sps:$4 sm:$0xff]  }
 0x136   :  { %v1477_v42 = vpop.f32.mrb[2].mxu1  ;;  %2074 = vmatprep.subr.bf16.mxu0 %v3174_v0  ;;  %v3205_v0 = vld [vmem:[#allocation7 + $0x120] ss:$8 sps:$4 sm:$0xff]  }
 0x137   :  { %v1478_v44 = vpop.f32.mrb[3].mxu1  ;;  %v3208_v42 = vld [vmem:[#allocation7 + $0x130] ss:$8 sps:$4 sm:$0xff]  }
 0x138   :  { %v3213_v44 = vld [vmem:[#allocation7 + $0x144] ss:$8 sps:$4 sm:$0xff]  }
 0x139   :  { %2075 = vmatpush1.bf16.msra.mxu0 %v3172_v41 }
 0x13a   :  { %2076 = vmatprep.subr.bf16.mxu0 %v3177_v43 }
 0x13d   :  { %2077 = vmatpush1.bf16.msra.mxu0 %v3175_v45 }
 0x13e   :  { %2078 = vmatprep.subr.bf16.mxu0 %v3180_v10  ;;  %v3211_v10 = vld [vmem:[#allocation7 + $0x140] ss:$8 sps:$4 sm:$0xff]  }
 0x141   :  { %2079 = vmatpush1.bf16.msra.mxu0 %v3178_v46  ;;  %v3216_v46 = vld [vmem:[#allocation7 + $0x154] ss:$8 sps:$4 sm:$0xff]  }
 0x142   :  { %2080 = vmatprep.subr.bf16.mxu0 %v3183_v47  ;;  %v3214_v47 = vld [vmem:[#allocation7 + $0x150] ss:$8 sps:$4 sm:$0xff]  }
 0x145   :  { %2081 = vmatpush1.bf16.msra.mxu0 %v3181_v48  ;;  %v3219_v48 = vld [vmem:[#allocation7 + $0x164] ss:$8 sps:$4 sm:$0xff]  }
 0x146   :  { %2082 = vmatprep.subr.bf16.mxu0 %v3186_v49  ;;  %v3217_v49 = vld [vmem:[#allocation7 + $0x160] ss:$8 sps:$4 sm:$0xff]  }
 0x149   :  { %2083 = vmatpush1.bf16.msra.mxu0 %v3184_v50  ;;  %v3222_v50 = vld [vmem:[#allocation7 + $0x174] ss:$8 sps:$4 sm:$0xff]  }
 0x14a   :  { %2084 = vmatprep.subr.bf16.mxu0 %v3189_v51  ;;  %v322_v51 = vsub.s32 2, %v3577_v2 }
 0x14d   :  { %2085 = vmatpush1.bf16.msra.mxu0 %v3187_v52  ;;  %v3220_v52 = vld [vmem:[#allocation7 + $0x170] ss:$8 sps:$4 sm:$0xff]  }
 0x14e   :  { %2086 = vmatprep.subr.bf16.mxu0 %v3192_v53  ;;  %v3225_v53 = vld [vmem:[#allocation7 + $0x184] ss:$8 sps:$4 sm:$0xff]  }
 0x151   :  { %2087 = vmatpush1.bf16.msra.mxu0 %v3190_v54  ;;  %v323_v54 = vrot.slane %v3583_v4, %v322_v51  ;;  %v3235_v4 = vld [vmem:[#allocation7 + $0x1c0] ss:$8 sps:$4 sm:$0xff]   ;;  %v3270_v51 = vld [vmem:[#allocation10 + $0x38] sm:$0xff]  }
 0x152   :  { %2088 = vmatprep.subr.bf16.mxu0 %v3195_v55  ;;  %v3223_v55 = vld [vmem:[#allocation7 + $0x180] ss:$8 sps:$4 sm:$0xff]  }
 0x155   :  { %2089 = vmatpush1.bf16.msra.mxu0 %v3193_v56  ;;  %v3228_v56 = vld [vmem:[#allocation7 + $0x194] ss:$8 sps:$4 sm:$0xff]  }
 0x156   :  { %2090 = vmatprep.subr.bf16.mxu0 %v3198_v57 }
 0x159   :  { %2091 = vmatpush1.bf16.msra.mxu0 %v3196_v58  ;;  %v3226_v58 = vld [vmem:[#allocation7 + $0x190] ss:$8 sps:$4 sm:$0xff]  }
 0x15a   :  { %2101 = vmatprep.subr.bf16.mxu0 %v3201_v59  ;;  %v3231_v59 = vld [vmem:[#allocation7 + $0x1a4] ss:$8 sps:$4 sm:$0xff]  }
 0x1ef   :  { %v1432_v8 = vpop.f32.mrb[0].mxu0 }
 0x1f0   :  { %v2810_v9 = vadd.f32 %v1432_v8, %v315_v6  ;;  %v1434_v11 = vpop.f32.mrb[1].mxu0  ;;  %v3240_v6 = vld [vmem:[#allocation7 + $0x1d4] ss:$8 sps:$4 sm:$0xff]   ;;  %v3243_v8 = vld [vmem:[#allocation7 + $0x1e4] ss:$8 sps:$4 sm:$0xff]  }
 0x1f1   :  { %v2812_v12 = vadd.f32 %v1434_v11, %v319_v7  ;;  %v1436_v13 = vpop.f32.mrb[2].mxu0  ;;  %v3238_v7 = vld [vmem:[#allocation7 + $0x1d0] ss:$8 sps:$4 sm:$0xff]   ;;  %v3241_v11 = vld [vmem:[#allocation7 + $0x1e0] ss:$8 sps:$4 sm:$0xff]  }
 0x1f2   :  { %v2811_v14 = vadd.f32 %v2810_v9, %v1473_v39  ;;  %v1437_v15 = vpop.f32.mrb[3].mxu0  ;;  %v3210_v39 = vld [vmem:[#allocation7 + $0x134] ss:$8 sps:$4 sm:$0xff]  }
 0x1f3   :  { %v2813_v16 = vadd.f32 %v2812_v12, %v3575_v40  ;;  %v3246_v13 = vld [vmem:[#allocation7 + $0x1f4] ss:$8 sps:$4 sm:$0xff]  }
 0x1f4   :  { %v1644_v17 = vmul.f32 0.5, %v2811_v14  ;;  %v3244_v14 = vld [vmem:[#allocation7 + $0x1f0] ss:$8 sps:$4 sm:$0xff]  }
 0x1f5   :  { %v1645_v18 = vmul.f32 0.5, %v2813_v16 }
 0x1f6   :  { %3271 = vtanh.f32 %v1644_v17  ;;  %v3251_v17 = vld [vmem:[#allocation8 + $0x50] sm:$0xff]  }
 0x1f7   :  { %3273 = vtanh.f32 %v1645_v18  ;;  %v3252_v18 = vld [vmem:[#allocation8 + $0x10] sm:$0xff]   ;;  %2763 = vmatprep.subr.bf16.mxu1 %v3251_v17 }
 0x1f8   :  { %2764 = vmatpush3.bf16.msra.mxu1 %v3252_v18 }
 0x1f9   :  { %2765 = vmatprep.subr.bf16.mxu1 %v3253_v19 }
 0x200   :  { %v3272_v21 = vpop.eup %3271  ;;  %v1637_v22 = vpop.f32.mrb[4].mxu1 }
 0x201   :  { %v3274_v23 = vpop.eup %3273  ;;  %v1652_v24 = vmul.f32 0.5, %v3272_v21  ;;  %v1639_v25 = vpop.f32.mrb[5].mxu1  ;;  %v2814_v57 = vadd.f32 %v1637_v22, %v323_v54  ;;  %v3255_v21 = vld [vmem:[#allocation8 + $0x60] sm:$0xff]  }
 0x202   :  { %v2815_v26 = vadd.f32 %v1639_v25, %v327_v20  ;;  %v1641_v27 = vpop.f32.mrb[6].mxu1  ;;  %v1653_v28 = vmul.f32 0.5, %v3274_v23  ;;  %v3254_v20 = vld [vmem:[#allocation8 + $0x18] sm:$0xff]   ;;  %v3256_v22 = vld [vmem:[#allocation8 + $0x20] sm:$0xff]   ;;  %v3257_v23 = vld [vmem:[#allocation8 + $0x68] sm:$0xff]  }
 0x203   :  { %v1656_v29 = vadd.f32 0.5, %v1652_v24  ;;  %v1642_v30 = vpop.f32.mrb[7].mxu1  ;;  %v1646_v60 = vmul.f32 0.5, %v2814_v57  ;;  %2766 = vmatpush3.bf16.msra.mxu1 %v3254_v20  ;;  %v3258_v24 = vld [vmem:[#allocation8 + $0x28] sm:$0xff]   ;;  %v3259_v25 = vld [vmem:[#allocation8 + $0x70] sm:$0xff]   ;;  %v3261_v27 = vld [vmem:[#allocation8 + $0x78] sm:$0xff]  }
 0x204   :  { %v1647_v31 = vmul.f32 0.5, %v2815_v26  ;;  %v1657_v32 = vadd.f32 0.5, %v1653_v28  ;;  %2767 = vmatprep.subr.bf16.mxu1 %v3255_v21  ;;  %v3260_v26 = vld [vmem:[#allocation8 + $0x30] sm:$0xff]   ;;  %v3262_v28 = vld [vmem:[#allocation8 + $0x38] sm:$0xff]   ;;  %v1728_v30 = vld [vmem:[%s3626_s4] sm:$0x3] }
 0x205   :  { %v1660_v35 = vpack.c.bf16 %v1656_v29, %v1656_v29  ;;  %v3441_v29 = vmov 0.0  }
 0x206   :  { %3275 = vtanh.f32 %v1647_v31  ;;  %v1661_v33 = vpack.c.bf16 %v1657_v32, %v1657_v32  ;;  %v1733_v31 = vrot.slane %v1728_v30, %v314_v3  ;;  %v1737_v32 = vrot.slane %v1728_v30, %v318_v5  ;;  %v3264_v5 = vld [vmem:[#allocation10 + $0x8] sm:$0xff]  }
 0x207   :  { %3277 = vtanh.f32 %v1646_v60  ;;  %2768 = vmatpush3.bf16.msra.mxu1 %v3256_v22 }
 0x208   :  { %2092 = vmatprep.mubr.bf16.mxu0 %v1661_v33  ;;  %2769 = vmatprep.subr.bf16.mxu1 %v3257_v23 }
 0x209   :  { %2093 = vmatmul.mubr.bf16.vlgmr.msra.gmra.mrb[4].mxu0 %v1660_v35 }
 0x20a   :  { %2102 = vmatpush1.bf16.msra.mxu0 %v3199_v34 }
 0x20b   :  { %2103 = vmatprep.subr.bf16.mxu0 %v3204_v36  ;;  %2770 = vmatpush3.bf16.msra.mxu1 %v3258_v24 }
 0x20c   :  { %2771 = vmatprep.subr.bf16.mxu1 %v3259_v25 }
 0x20e   :  { %2104 = vmatpush1.bf16.msra.mxu0 %v3202_v37 }
 0x20f   :  { %2105 = vmatprep.subr.bf16.mxu0 %v3207_v38  ;;  %2772 = vmatpush3.bf16.msra.mxu1 %v3260_v26 }
 0x210   :  { %v3276_v40 = vpop.eup %3275  ;;  %2773 = vmatprep.subr.bf16.mxu1 %v3261_v27 }
 0x211   :  { %v1655_v41 = vmul.f32 0.5, %v3276_v40  ;;  %v3278_v9 = vpop.eup %3277 }
 0x212   :  { %2106 = vmatpush1.bf16.msra.mxu0 %v3205_v0  ;;  %v1654_v12 = vmul.f32 0.5, %v3278_v9 }
 0x213   :  { %2107 = vmatprep.subr.bf16.mxu0 %v3210_v39  ;;  %v1659_v43 = vadd.f32 0.5, %v1655_v41  ;;  %2774 = vmatpush3.bf16.msra.mxu1 %v3262_v28 }
 0x214   :  { %v1658_v15 = vadd.f32 0.5, %v1654_v12  ;;  %2790 = vmatprep.subr.bf16.mxu1 %v3441_v29 }
 0x215   :  { %v1663_v45 = vpack.c.bf16 %v1659_v43, %v1659_v43 }
 0x216   :  { %2108 = vmatpush1.bf16.msra.mxu0 %v3208_v42  ;;  %v1662_v16 = vpack.c.bf16 %v1658_v15, %v1658_v15 }
 0x217   :  { %2133 = vmatprep.mubr.bf16.mxu0 %v1663_v45  ;;  %2109 = vmatprep.subr.bf16.mxu0 %v3213_v44 }
 0x21a   :  { %2110 = vmatpush1.bf16.msra.mxu0 %v3211_v10  ;;  %v3263_v10 = vld [vmem:[#allocation10] sm:$0xff]  }
 0x21b   :  { %2111 = vmatprep.subr.bf16.mxu0 %v3216_v46  ;;  %v3265_v46 = vld [vmem:[#allocation10 + $0x10] sm:$0xff]  }
 0x21e   :  { %2112 = vmatpush1.bf16.msra.mxu0 %v3214_v47  ;;  %v3266_v47 = vld [vmem:[#allocation10 + $0x18] sm:$0xff]  }
 0x21f   :  { %2113 = vmatprep.subr.bf16.mxu0 %v3219_v48  ;;  %v3267_v48 = vld [vmem:[#allocation10 + $0x20] sm:$0xff]  }
 0x222   :  { %2114 = vmatpush1.bf16.msra.mxu0 %v3217_v49  ;;  %v3268_v49 = vld [vmem:[#allocation10 + $0x28] sm:$0xff]  }
 0x223   :  { %2115 = vmatprep.subr.bf16.mxu0 %v3222_v50  ;;  %v3269_v50 = vld [vmem:[#allocation10 + $0x30] sm:$0xff]  }
 0x226   :  { %2116 = vmatpush1.bf16.msra.mxu0 %v3220_v52 }
 0x227   :  { %2117 = vmatprep.subr.bf16.mxu0 %v3225_v53  ;;  %v2733_v53 = vld [vmem:[%s3628_s6] ss:$0 sm:$0xff]  ;;  %s3443_s6 = smov [#allocation11]  }
 0x228   :  { %s2460_s12 = sshll.u32 %s3443_s6, 4  ;;  %s2461_s12 = int_to_ptr.vmem [resolvable:$true] %s2460_s12 }
 0x229   :  { %p3404_p13 = scmp.lt.s32.totalorder %s2461_s12, %s2461_s12 }
 0x22a   :  { %2118 = vmatpush1.bf16.msra.mxu0 %v3223_v55 }
 0x22b   :  { %2119 = vmatprep.subr.bf16.mxu0 %v3228_v56 }
 0x22e   :  { %2120 = vmatpush1.bf16.msra.mxu0 %v3226_v58 }
 0x22f   :  { %2121 = vmatprep.subr.bf16.mxu0 %v3231_v59 }
 0x232   :  { %2122 = vmatpush1.bf16.msra.mxu0 %v3229_v61 }
 0x233   :  { %2123 = vmatprep.subr.bf16.mxu0 %v3234_v62 }
 0x236   :  { %2124 = vmatpush1.bf16.msra.mxu0 %v3232_v63 }
 0x237   :  { %2125 = vmatprep.subr.bf16.mxu0 %v3237_v1  ;;  %v2750_v1 = vld [vmem:[%s3630_s8] ss:$0 sm:$0xff]  ;;  %s3399_s8 = scalar_lea.vmem %s2461_s12, 128 }
 0x238   :  { %p3400_p12 = scmp.ne.s32.totalorder %s2461_s12, %s3399_s8  ;;  %p3405_p0 = scmp.lt.s32.totalorder %s3399_s8, %s3399_s8 }
 0x23a   :  { %2126 = vmatpush1.bf16.msra.mxu0 %v3235_v4  ;;  %p3406_p1 = por %p3405_p0, %p3404_p13 }
 0x23b   :  { %2127 = vmatprep.subr.bf16.mxu0 %v3240_v6 }
 0x23c   :  { %p3407_p2 = pnand %p3406_p1, %p3400_p12 }
 0x23e   :  { %2128 = vmatpush1.bf16.msra.mxu0 %v3238_v7 }
 0x23f   :  { %2129 = vmatprep.subr.bf16.mxu0 %v3243_v8 }
 0x242   :  { %2130 = vmatpush1.bf16.msra.mxu0 %v3241_v11 }
 0x243   :  { %2131 = vmatprep.subr.bf16.mxu0 %v3246_v13 }
 0x246   :  { %2132 = vmatpush1.bf16.msra.mxu0 %v3244_v14 }
 0x249   :  { %2134 = vmatmul.mubr.bf16.vlgmr.msra.gmra.mrb[4].mxu0 %v1662_v16 }
 0x31c   :  { %v2135_v33 = vpop.f32.mrb[4].mxu0 }
 0x31d   :  { %v2816_v34 = vadd.f32 %v2135_v33, %v1733_v31  ;;  %v2137_v35 = vpop.f32.mrb[5].mxu0 }
 0x31e   :  { %v2817_v36 = vadd.f32 %v2137_v35, %v1737_v32  ;;  %v2139_v37 = vpop.f32.mrb[6].mxu0 }
 0x31f   :  { %v2142_v38 = vmul.f32 0.5, %v2816_v34  ;;  %v2140_v0 = vpop.f32.mrb[7].mxu0 }
 0x320   :  { %v2143_v39 = vmul.f32 0.5, %v2817_v36 }
 0x321   :  { %3279 = vtanh.f32 %v2142_v38 }
 0x322   :  { %3281 = vtanh.f32 %v2143_v39 }
 0x32b   :  { %v3280_v40 = vpop.eup %3279 }
 0x32c   :  { %v3282_v41 = vpop.eup %3281  ;;  %v2146_v42 = vmul.f32 0.5, %v3280_v40 }
 0x32d   :  { %v2147_v43 = vmul.f32 0.5, %v3282_v41 }
 0x32e   :  { %v2148_v44 = vadd.f32 0.5, %v2146_v42 }
 0x32f   :  { %v2149_v45 = vadd.f32 0.5, %v2147_v43 }
 0x330   :  { %v2150_v2 = vpack.c.bf16 %v2148_v44, %v2148_v44 }
 0x331   :  { %v2151_v3 = vpack.c.bf16 %v2149_v45, %v2149_v45 }
 0x333   :  { %2319 = vmatprep.mubr.bf16.mxu1 %v2151_v3 }
 0x334   :  { %2320 = vmatmul.mubr.bf16.vlgmr.msra.gmra.mrb[8].mxu1 %v2150_v2 }
 0x335   :  { %2791 = vmatpush3.bf16.msra.mxu1 %v3263_v10  ;;  %2806 = vmatprep.mubr.msk.bf16.mxu1 %vm3442_vm1, %v3441_v29 }
 0x336   :  { %2792 = vmatprep.subr.bf16.mxu1 %v3441_v29 }
 0x339   :  { %2793 = vmatpush3.bf16.msra.mxu1 %v3264_v5 }
 0x33a   :  { %2794 = vmatprep.subr.bf16.mxu1 %v3441_v29 }
 0x33d   :  { %2795 = vmatpush3.bf16.msra.mxu1 %v3265_v46 }
 0x33e   :  { %2796 = vmatprep.subr.bf16.mxu1 %v3441_v29 }
 0x341   :  { %2797 = vmatpush3.bf16.msra.mxu1 %v3266_v47 }
 0x342   :  { %2798 = vmatprep.subr.bf16.mxu1 %v3441_v29 }
 0x345   :  { %2799 = vmatpush3.bf16.msra.mxu1 %v3267_v48 }
 0x346   :  { %2800 = vmatprep.subr.bf16.mxu1 %v3441_v29 }
 0x349   :  { %2801 = vmatpush3.bf16.msra.mxu1 %v3268_v49 }
 0x34a   :  { %2802 = vmatprep.subr.bf16.mxu1 %v3441_v29 }
 0x34d   :  { %2803 = vmatpush3.bf16.msra.mxu1 %v3269_v50 }
 0x34e   :  { %2804 = vmatprep.subr.bf16.mxu1 %v3441_v29 }
 0x351   :  { %2805 = vmatpush3.bf16.msra.mxu1 %v3270_v51 }
 0x407   :  { %v2775_v52 = vpop.f32.mrb[8].mxu1 }
 0x408   :  { %v2776_v54 = vpop.f32.mrb[9].mxu1 }
 0x409   :  { %v2777_v55 = vadd.f32 %v2776_v54, %v2775_v52  ;;  %v2778_v56 = vpop.f32.mrb[10].mxu1 }
 0x40a   :  { %v2779_v57 = vpop.f32.mrb[11].mxu1 }
 0x40b   :  { %v2322_v58 = vadd.f32 %v2777_v55, %v2733_v53 }
 0x40d   :  { %v2327_v59 = vmul.f32 0.5, %v2322_v58 }
 0x40f   :  { %3283 = vtanh.f32 %v2327_v59 }
 0x419   :  { %v3284_v60 = vpop.eup %3283 }
 0x41a   :  { %v2329_v61 = vmul.f32 0.5, %v3284_v60 }
 0x41c   :  { %v2330_v62 = vadd.f32 0.5, %v2329_v61 }
 0x41e   :  { %v2331_v63 = vpack.c.bf16 %v2330_v62, %v2330_v62 }
 0x420   :  { %2807 = vmatmul.mubr.bf16.vlgmr.msra.gmra.mrb[12].mxu1 %v2331_v63 }
 0x4f3   :  { %v2437_v4 = vpop.f32.mrb[12].mxu1 }
 0x4f4   :  { %v2438_v6 = vadd.f32 %v2750_v1, %v2437_v4  ;;  %v2808_v7 = vpop.f32.mrb[13].mxu1 }
 0x4f5   :  { %v2440_v8 = vpop.f32.mrb[14].mxu1 }
 0x4f6   :  { %2443 = vmax.xlane.f32.xlu0 %v2438_v6  ;;  %v2809_v9 = vpop.f32.mrb[15].mxu1 }
 0x583   :  { %v2444_v11 = vpop.xlane.xlu0 %2443 }
 0x584   :  { %v2445_v12 = vsub.f32 %v2438_v6, %v2444_v11 }
 0x586   :  { %v2446_v13 = vmul.f32 1.442695, %v2445_v12 }
 0x588   :  { %3285 = vpow2.f32 %v2446_v13 }
 0x592   :  { %v3286_v14 = vpop.eup %3285 }
 0x593   :  { %2448 = vadd.xlane.f32.xlu0 %v3286_v14 }
 0x620   :  { %v2449_v15 = vpop.xlane.xlu0 %2448 }
 0x621   :  { %3287 = vlog2.f32 %v2449_v15 }
 0x62b   :  { %v3288_v16 = vpop.eup %3287 }
 0x62c   :  { %v2451_v17 = vmul.f32 0.6931472, %v3288_v16 }
 0x62e   :  { %v2452_v18 = vsub.f32 %v2445_v12, %v2451_v17 }
 0x630   :  { %2453 = vst [vmem:[#allocation11] sm:$0xff] %v2452_v18 }
 0x631   :  { %3410 = shalt.err (!%p3407_p2)
}
 0x632   :  { %s3411_s15 = scalar_lea.hbm %s3631_s9, 128 }
 0x633   :  { %p3412_p3 = scmp.ne.s32.totalorder %s3631_s9, %s3411_s15  ;;  %p3415_p4 = scmp.lt.u32.totalorder %s3411_s15, %s3631_s9 }
 0x635   :  { %p3417_p5 = pnand %p3415_p4, %p3412_p3 }
 0x637   :  { %3420 = shalt.err (!%p3417_p5)
}
 0x638   :  { %2463 = dma.vmem_to_hbm [thread:$0]  %s2461_s12, 128, %s3631_s9, [#allocation4]  }
 0x639   :  { %3427 = dma.done.wait [#allocation4], 128  }
 0x63a   :  { %3428 = vsyncadd [#allocation4], 4294967168 }
 0x63b   :  { %2467 = vsyncpa [#allocation3], 1 }
 0x63c   :  { %2468 = vsyncpa [#allocation6], 1 }
 0x63d   :  { %2469 = vsyncpa [#allocation9], 1 }
 0x63e   :  { %2470 = vsyncpa [#allocation4], 1 }

</bundles_post_ra>
